<compile_context>
chip_gen: v7x
topology: tpu7x:2x2x1
jax: 0.10.0
libtpu: 0.0.40
codegen_flags: <defaults>
</compile_context>

<pallas_src>
import functools
import math

import jax
import jax.numpy as jnp
from jax.experimental import pallas as pl
from jax.experimental.pallas import tpu as pltpu


# ----------------------------------------------------------------------------
# Fused forward kernel
# ----------------------------------------------------------------------------
def _hybrid_kernel(
    # inputs ------------------------------------------------------------------
    x_ref,
    ew1_ref, eb1_ref, ew2_ref, eb2_ref, ew3_ref, eb3_ref,
    emb_ref, embt_ref, embsq_ref,
    dw1_hbm, dw2_hbm, dw3_hbm, db1_ref, db2_ref, db3_ref,
    ce1w_ref, ce1b_ref, ce2w_ref, ce2b_ref, ce3w_ref, ce3b_ref,
    cd1we_ref, cd1wo_ref, cd1b_ref,
    cd2we_ref, cd2wo_ref, cd2b_ref,
    cd3we_ref, cd3wo_ref, cd3b_ref,
    # outputs -----------------------------------------------------------------
    cae_ref, zvqr_ref, idx_ref, loss_ref,
    # scratch -----------------------------------------------------------------
    dw1_v, dw2_v, dw3_v, dma_sem,
    # static ------------------------------------------------------------------
    *, commitment_cost, batch, length,
):
    f32 = jnp.float32

    # ---- Prefetch decoder-MLP weights HBM -> VMEM behind encoder/VQ compute ---
    cp1 = pltpu.make_async_copy(dw1_hbm, dw1_v, dma_sem.at[0])
    cp2 = pltpu.make_async_copy(dw2_hbm, dw2_v, dma_sem.at[1])
    cp3 = pltpu.make_async_copy(dw3_hbm, dw3_v, dma_sem.at[2])
    cp1.start(); cp2.start(); cp3.start()

    def dense(h, w, b_ref, act):
        y = jnp.dot(h.astype(w.dtype), w, preferred_element_type=f32) + b_ref[...]
        if act == "relu":
            return jnp.maximum(y, 0.0)
        if act == "tanh":
            return jnp.tanh(y)
        return y

    # ---- VQ-VAE encoder (fused 3-layer MLP, bf16 weights on the MXU) ----------
    z = dense(dense(dense(x_ref[...], ew1_ref[...], eb1_ref, "relu"),
                    ew2_ref[...], eb2_ref, "relu"),
              ew3_ref[...], eb3_ref, "none")                    # (B, D) f32

    # ---- Vector quantisation ---------------------------------------------------
    emb = emb_ref[...]                                          # (K, D)
    num_emb = emb.shape[0]
    cross = jnp.dot(z, embt_ref[...], preferred_element_type=f32)   # (B, K)
    # ||z||^2 dropped: per-row constant, so argmin / z_q / loss are unchanged.
    dists = embsq_ref[...] - 2.0 * cross                        # (B, K)
    code_iota = jax.lax.broadcasted_iota(jnp.int32, dists.shape, 1)
    min_d = jnp.min(dists, axis=1, keepdims=True)
    idx = jnp.min(jnp.where(dists == min_d, code_iota, num_emb),
                  axis=1, keepdims=True)                        # (B, 1) first argmin
    one_hot = (code_iota == idx).astype(f32)                    # (B, K)
    z_q = jnp.dot(one_hot, emb, preferred_element_type=f32)     # (B, D)
    loss_ref[...] = jnp.broadcast_to(
        commitment_cost * jnp.mean((z_q - z) ** 2), (1, 1))
    idx_ref[...] = idx
    # Forward value of the straight-through estimator is exactly z_q.
    # TODO(synk): STE / detach gradient semantics would need jax.custom_vjp.

    # ---- VQ-VAE decoder: wait on prefetched weights, fused 3-layer MLP --------
    cp1.wait(); cp2.wait(); cp3.wait()
    xr = dense(dense(dense(z_q, dw1_v[...], db1_ref, "relu"),
                     dw2_v[...], db2_ref, "relu"),
               dw3_v[...], db3_ref, "tanh")                     # (B, L)

    # one packed store for [z | x_recon_vqvae]
    zvqr_ref[...] = jnp.concatenate([z, xr], axis=1)

    # ---- CAE conv path: activations are (C, B*L), positions on lanes ----------
    B, L = batch, length
    G = B * L
    pos = jax.lax.broadcasted_iota(jnp.int32, (1, G), 1) & (L - 1)

    def shift(a, n):
        """a[:, g] <- a[:, g - n], zero-filled per length-L batch segment."""
        r = pltpu.roll(a, shift=n % G, axis=1)                  # XLU lane rotate
        if n > 0:
            return jnp.where(pos >= n, r, 0.0)
        return jnp.where(pos < L + n, r, 0.0)

    def conv(a, w_ref, b_ref, s_in):
        """Conv1d(k=3, stride=2, pad=1) + ReLU, 'a trous' at input stride s_in."""
        am, ap = shift(a, s_in), shift(a, -s_in)
        w = w_ref[...]                                          # (C_out, 3*C_in)
        if a.shape[0] == 1:       # C_in == 1: three broadcast multiplies (VPU)
            y = w[:, 0:1] * am + w[:, 1:2] * a + w[:, 2:3] * ap
        else:                     # fused taps: single MXU matmul
            y = jnp.dot(w, jnp.concatenate([am, a, ap], axis=0),
                        preferred_element_type=f32)
        return jnp.maximum(y + b_ref[...], 0.0)                 # valid at stride 2*s_in

    def deconv(a, we_ref, wo_ref, b_ref, s_in, act):
        """ConvTranspose1d(k=3, stride=2, pad=1, out_pad=1) at input stride s_in."""
        s_out = s_in // 2
        even = jnp.dot(we_ref[...], a, preferred_element_type=f32)
        odd = jnp.dot(wo_ref[...],
                      jnp.concatenate([shift(a, s_out), shift(a, -s_out)], axis=0),
                      preferred_element_type=f32)
        y = jnp.where((pos & (s_in - 1)) == 0, even, odd) + b_ref[...]
        return jnp.maximum(y, 0.0) if act == "relu" else jnp.tanh(y)

    # fold batch into the lane axis: (B, L) -> (1, B*L)
    a = jnp.concatenate([xr[b:b + 1, :] for b in range(B)], axis=1)
    a = conv(a, ce1w_ref, ce1b_ref, 1)                          # (16, G)   stride 2
    a = conv(a, ce2w_ref, ce2b_ref, 2)                          # (32, G)   stride 4
    a = conv(a, ce3w_ref, ce3b_ref, 4)                          # (Dcae, G) stride 8
    a = deconv(a, cd1we_ref, cd1wo_ref, cd1b_ref, 8, "relu")    # (32, G)   stride 4
    a = deconv(a, cd2we_ref, cd2wo_ref, cd2b_ref, 4, "relu")    # (16, G)   stride 2
    a = deconv(a, cd3we_ref, cd3wo_ref, cd3b_ref, 2, "tanh")    # (1, G)    stride 1
    # lane-dense store; the (B*L) -> (B, L) unfold is a free reshape in the wrapper
    cae_ref[...] = a


# ----------------------------------------------------------------------------
# Wrapper: one pallas_call, whole-array VMEM blocks, no grid
# ----------------------------------------------------------------------------
def _vmem():
    return pl.BlockSpec(memory_space=pltpu.MemorySpace.VMEM)


def _any():
    return pl.BlockSpec(memory_space=pl.ANY)


@functools.partial(jax.jit, static_argnames=("commitment_cost",))
def hybrid_forward(kp, x, commitment_cost=0.25):
    B, L = x.shape
    assert L >= 8 and (L & (L - 1)) == 0, "input_dim must be a power of two >= 8"
    latent = kp["enc_w3"].shape[1]

    args = (
        x,
        kp["enc_w1"], kp["enc_b1"], kp["enc_w2"], kp["enc_b2"],
        kp["enc_w3"], kp["enc_b3"],
        kp["emb"], kp["emb_t"], kp["emb_sq"],
        kp["dec_w1"], kp["dec_w2"], kp["dec_w3"],
        kp["dec_b1"], kp["dec_b2"], kp["dec_b3"],
        kp["cenc1_w"], kp["cenc1_b"], kp["cenc2_w"], kp["cenc2_b"],
        kp["cenc3_w"], kp["cenc3_b"],
        kp["cdec1_we"], kp["cdec1_wo"], kp["cdec1_b"],
        kp["cdec2_we"], kp["cdec2_wo"], kp["cdec2_b"],
        kp["cdec3_we"], kp["cdec3_wo"], kp["cdec3_b"],
    )
    # dec_w1..3 stay in ANY/HBM and are DMA'd inside the kernel (overlapped with
    # encoder/VQ compute); everything else is a whole-array VMEM block.
    in_specs = [_vmem()] * 10 + [_any()] * 3 + [_vmem()] * 18

    out_shape = (
        jax.ShapeDtypeStruct((1, B * L), jnp.float32),       # x_recon_cae (lane-dense)
        jax.ShapeDtypeStruct((B, latent + L), jnp.float32),  # [z | x_recon_vqvae]
        jax.ShapeDtypeStruct((B, 1), jnp.int32),             # TODO(synk): torch returns int64 indices
        jax.ShapeDtypeStruct((1, 1), jnp.float32),           # commitment loss
    )
    outs = pl.pallas_call(
        functools.partial(_hybrid_kernel, commitment_cost=commitment_cost,
                          batch=B, length=L),
        out_shape=out_shape,
        in_specs=in_specs,
        out_specs=tuple(_vmem() for _ in out_shape),
        scratch_shapes=[
            pltpu.VMEM(kp["dec_w1"].shape, kp["dec_w1"].dtype),
            pltpu.VMEM(kp["dec_w2"].shape, kp["dec_w2"].dtype),
            pltpu.VMEM(kp["dec_w3"].shape, kp["dec_w3"].dtype),
            pltpu.SemaphoreType.DMA((3,)),
        ],
    )(*args)
    cae_flat, zvqr, idx, loss = outs
    x_recon_cae = cae_flat.reshape(B, L)          # row-major: free metadata reshape
    z = zvqr[:, :latent]
    x_recon_vqvae = zvqr[:, latent:]
    return x_recon_cae, x_recon_vqvae, z, idx[:, 0], loss[0, 0]


# ----------------------------------------------------------------------------
# Parameter init (PyTorch-style uniform bounds, torch layouts) + one-time repack
# ----------------------------------------------------------------------------
def init_params(key, input_dim, latent_vq, latent_cae, num_emb, emb_dim):
    keys = iter(jax.random.split(key, 32))

    def u(shape, bound):
        return jax.random.uniform(next(keys), shape, jnp.float32, -bound, bound)

    def lin(d_in, d_out):
        b = 1.0 / math.sqrt(d_in)
        return u((d_in, d_out), b), u((1, d_out), b)

    def conv(c_in, c_out, k=3):
        b = 1.0 / math.sqrt(c_in * k)
        return u((c_out, c_in, k), b), u((c_out,), b)

    def deconv(c_in, c_out, k=3):
        b = 1.0 / math.sqrt(c_out * k)
        return u((c_in, c_out, k), b), u((c_out,), b)

    p = {}
    p["enc1"], p["enc2"], p["enc3"] = lin(input_dim, 512), lin(512, 256), lin(256, latent_vq)
    p["codebook"] = jax.random.uniform(next(keys), (num_emb, emb_dim), jnp.float32,
                                       -1.0 / num_emb, 1.0 / num_emb)
    p["dec1"], p["dec2"], p["dec3"] = lin(emb_dim, 256), lin(256, 512), lin(512, input_dim)
    p["cenc1"], p["cenc2"], p["cenc3"] = conv(1, 16), conv(16, 32), conv(32, latent_cae)
    p["cdec1"], p["cdec2"], p["cdec3"] = deconv(latent_cae, 32), deconv(32, 16), deconv(16, 1)
    return p


def prepare_params(p):
    """One-time repack into kernel layouts:
       * MLP weights in bf16 (halves per-call weight DMA; matmuls accumulate f32),
       * pre-transposed codebook + precomputed ||e||^2,
       * conv taps packed as (C_out, 3*C_in); deconv split into even (C_out, C_in)
         and odd (C_out, 2*C_in) = [tap2 | tap0]; biases as (C_out, 1)."""
    bf16 = jnp.bfloat16

    def conv_pack(w):      # torch Conv1d (C_out, C_in, 3) -> (C_out, 3*C_in) [tap0|tap1|tap2]
        co, ci, k = w.shape
        return jnp.transpose(w, (0, 2, 1)).reshape(co, k * ci)

    def deconv_pack(w):    # torch ConvTranspose1d (C_in, C_out, 3) -> even, odd
        taps = jnp.transpose(w, (2, 1, 0))            # (3, C_out, C_in)
        return taps[1], jnp.concatenate([taps[2], taps[0]], axis=1)

    emb = p["codebook"]
    kp = {
        "enc_w1": p["enc1"][0].astype(bf16), "enc_b1": p["enc1"][1],
        "enc_w2": p["enc2"][0].astype(bf16), "enc_b2": p["enc2"][1],
        "enc_w3": p["enc3"][0].astype(bf16), "enc_b3": p["enc3"][1],
        "emb": emb, "emb_t": emb.T,
        "emb_sq": jnp.sum(emb * emb, axis=1)[None, :],
        "dec_w1": p["dec1"][0].astype(bf16), "dec_b1": p["dec1"][1],
        "dec_w2": p["dec2"][0].astype(bf16), "dec_b2": p["dec2"][1],
        "dec_w3": p["dec3"][0].astype(bf16), "dec_b3": p["dec3"][1],
    }
    for name in ("cenc1", "cenc2", "cenc3"):
        w, b = p[name]
        kp[name + "_w"] = conv_pack(w)
        kp[name + "_b"] = b[:, None]
    for name in ("cdec1", "cdec2", "cdec3"):
        w, b = p[name]
        we, wo = deconv_pack(w)
        kp[name + "_we"] = we
        kp[name + "_wo"] = wo
        kp[name + "_b"] = b[:, None]
    return kp


# ----------------------------------------------------------------------------
if __name__ == "__main__":
    B = 2
    input_dim = 64            # power of two >= 8 (three stride-2 convs)
    latent_dim_vqvae = 32     # == embedding_dim (required by the VQ distance)
    latent_dim_cae = 8
    num_embeddings = 16
    embedding_dim = 32

    root = jax.random.PRNGKey(0)
    pkey, xkey = jax.random.split(root)
    params = init_params(pkey, input_dim, latent_dim_vqvae, latent_dim_cae,
                         num_embeddings, embedding_dim)
    kparams = prepare_params(params)
    x = jax.random.normal(xkey, (B, input_dim), dtype=jnp.float32)

    outs = hybrid_forward(kparams, x)
    outs = jax.block_until_ready(outs)

    x_recon_cae, x_recon_vqvae, z_vqvae, enc_idx, commit_loss = outs
    assert x_recon_cae.shape == (B, input_dim)
    assert x_recon_vqvae.shape == (B, input_dim)
    assert z_vqvae.shape == (B, latent_dim_vqvae)
    assert enc_idx.shape == (B,)
    assert commit_loss.shape == ()
    assert bool(jnp.all(jnp.isfinite(x_recon_cae)))
    assert bool(jnp.all(jnp.isfinite(x_recon_vqvae)))

    print("KERNEL_OK")
</pallas_src>

<mosaic_0001>
module attributes {stable_mosaic.version = 11 : i64} {
  func.func @_hybrid_kernel(%arg0: memref<2x64xf32, #tpu.memory_space<vmem>>, %arg1: memref<64x512xbf16, #tpu.memory_space<vmem>>, %arg2: memref<1x512xf32, #tpu.memory_space<vmem>>, %arg3: memref<512x256xbf16, #tpu.memory_space<vmem>>, %arg4: memref<1x256xf32, #tpu.memory_space<vmem>>, %arg5: memref<256x32xbf16, #tpu.memory_space<vmem>>, %arg6: memref<1x32xf32, #tpu.memory_space<vmem>>, %arg7: memref<16x32xf32, #tpu.memory_space<vmem>>, %arg8: memref<32x16xf32, #tpu.memory_space<vmem>>, %arg9: memref<1x16xf32, #tpu.memory_space<vmem>>, %arg10: memref<32x256xbf16, #tpu.memory_space<any>>, %arg11: memref<256x512xbf16, #tpu.memory_space<any>>, %arg12: memref<512x64xbf16, #tpu.memory_space<any>>, %arg13: memref<1x256xf32, #tpu.memory_space<vmem>>, %arg14: memref<1x512xf32, #tpu.memory_space<vmem>>, %arg15: memref<1x64xf32, #tpu.memory_space<vmem>>, %arg16: memref<16x3xf32, #tpu.memory_space<vmem>>, %arg17: memref<16x1xf32, #tpu.memory_space<vmem>>, %arg18: memref<32x48xf32, #tpu.memory_space<vmem>>, %arg19: memref<32x1xf32, #tpu.memory_space<vmem>>, %arg20: memref<8x96xf32, #tpu.memory_space<vmem>>, %arg21: memref<8x1xf32, #tpu.memory_space<vmem>>, %arg22: memref<32x8xf32, #tpu.memory_space<vmem>>, %arg23: memref<32x16xf32, #tpu.memory_space<vmem>>, %arg24: memref<32x1xf32, #tpu.memory_space<vmem>>, %arg25: memref<16x32xf32, #tpu.memory_space<vmem>>, %arg26: memref<16x64xf32, #tpu.memory_space<vmem>>, %arg27: memref<16x1xf32, #tpu.memory_space<vmem>>, %arg28: memref<1x16xf32, #tpu.memory_space<vmem>>, %arg29: memref<1x32xf32, #tpu.memory_space<vmem>>, %arg30: memref<1x1xf32, #tpu.memory_space<vmem>>, %arg31: memref<1x128xf32, #tpu.memory_space<vmem>>, %arg32: memref<2x96xf32, #tpu.memory_space<vmem>>, %arg33: memref<2x1xi32, #tpu.memory_space<vmem>>, %arg34: memref<1x1xf32, #tpu.memory_space<vmem>>, %arg35: memref<32x256xbf16, #tpu.memory_space<vmem>>, %arg36: memref<256x512xbf16, #tpu.memory_space<vmem>>, %arg37: memref<512x64xbf16, #tpu.memory_space<vmem>>, %arg38: memref<3x!tpu.dma_semaphore, #tpu.memory_space<semaphore_mem>>) attributes {dimension_semantics = [], scalar_prefetch = 0 : i64, scratch_operands = 4 : i64, tpu.core_type = #tpu.core_type<tc>} {
    %c0_i32 = arith.constant 0 : i32
    %0 = tpu.memref_slice %arg38[%c0_i32] : memref<3x!tpu.dma_semaphore, #tpu.memory_space<semaphore_mem>> -> memref<1x!tpu.dma_semaphore, #tpu.memory_space<semaphore_mem>>
    %1 = tpu.memref_squeeze %0 : memref<1x!tpu.dma_semaphore, #tpu.memory_space<semaphore_mem>> -> memref<!tpu.dma_semaphore, #tpu.memory_space<semaphore_mem>>
    tpu.enqueue_dma source(%arg10 : memref<32x256xbf16, #tpu.memory_space<any>>) target(%arg35 : memref<32x256xbf16, #tpu.memory_space<vmem>>) target_semaphore(%1 : memref<!tpu.dma_semaphore, #tpu.memory_space<semaphore_mem>>)
    %c1_i32 = arith.constant 1 : i32
    %2 = tpu.memref_slice %arg38[%c1_i32] : memref<3x!tpu.dma_semaphore, #tpu.memory_space<semaphore_mem>> -> memref<1x!tpu.dma_semaphore, #tpu.memory_space<semaphore_mem>>
    %3 = tpu.memref_squeeze %2 : memref<1x!tpu.dma_semaphore, #tpu.memory_space<semaphore_mem>> -> memref<!tpu.dma_semaphore, #tpu.memory_space<semaphore_mem>>
    tpu.enqueue_dma source(%arg11 : memref<256x512xbf16, #tpu.memory_space<any>>) target(%arg36 : memref<256x512xbf16, #tpu.memory_space<vmem>>) target_semaphore(%3 : memref<!tpu.dma_semaphore, #tpu.memory_space<semaphore_mem>>)
    %c2_i32 = arith.constant 2 : i32
    %4 = tpu.memref_slice %arg38[%c2_i32] : memref<3x!tpu.dma_semaphore, #tpu.memory_space<semaphore_mem>> -> memref<1x!tpu.dma_semaphore, #tpu.memory_space<semaphore_mem>>
    %5 = tpu.memref_squeeze %4 : memref<1x!tpu.dma_semaphore, #tpu.memory_space<semaphore_mem>> -> memref<!tpu.dma_semaphore, #tpu.memory_space<semaphore_mem>>
    tpu.enqueue_dma source(%arg12 : memref<512x64xbf16, #tpu.memory_space<any>>) target(%arg37 : memref<512x64xbf16, #tpu.memory_space<vmem>>) target_semaphore(%5 : memref<!tpu.dma_semaphore, #tpu.memory_space<semaphore_mem>>)
    %c0 = arith.constant 0 : index
    %c0_0 = arith.constant 0 : index
    %6 = vector.load %arg0[%c0, %c0_0] : memref<2x64xf32, #tpu.memory_space<vmem>>, vector<2x64xf32>
    %c0_1 = arith.constant 0 : index
    %c0_2 = arith.constant 0 : index
    %7 = vector.load %arg1[%c0_1, %c0_2] : memref<64x512xbf16, #tpu.memory_space<vmem>>, vector<64x512xbf16>
    %8 = arith.truncf %6 : vector<2x64xf32> to vector<2x64xbf16>
    %cst = arith.constant dense<0.000000e+00> : vector<2x512xf32>
    %9 = tpu.matmul %8, %7, %cst {dimension_numbers = #tpu.dot_dimension_numbers<[1], [0], [0], [1], [0, 0, 1, 1], [], []>} : vector<2x64xbf16>, vector<64x512xbf16>, vector<2x512xf32> -> vector<2x512xf32>
    %c0_3 = arith.constant 0 : index
    %c0_4 = arith.constant 0 : index
    %10 = vector.load %arg2[%c0_3, %c0_4] : memref<1x512xf32, #tpu.memory_space<vmem>>, vector<1x512xf32>
    %11 = vector.broadcast %10 : vector<1x512xf32> to vector<2x512xf32>
    %12 = arith.addf %9, %11 : vector<2x512xf32>
    %cst_5 = arith.constant 0.000000e+00 : f32
    %13 = vector.broadcast %cst_5 : f32 to vector<2x512xf32>
    %14 = arith.maximumf %12, %13 : vector<2x512xf32>
    %c0_6 = arith.constant 0 : index
    %c0_7 = arith.constant 0 : index
    %15 = vector.load %arg3[%c0_6, %c0_7] : memref<512x256xbf16, #tpu.memory_space<vmem>>, vector<512x256xbf16>
    %16 = arith.truncf %14 : vector<2x512xf32> to vector<2x512xbf16>
    %cst_8 = arith.constant dense<0.000000e+00> : vector<2x256xf32>
    %17 = tpu.matmul %16, %15, %cst_8 {dimension_numbers = #tpu.dot_dimension_numbers<[1], [0], [0], [1], [0, 0, 1, 1], [], []>} : vector<2x512xbf16>, vector<512x256xbf16>, vector<2x256xf32> -> vector<2x256xf32>
    %c0_9 = arith.constant 0 : index
    %c0_10 = arith.constant 0 : index
    %18 = vector.load %arg4[%c0_9, %c0_10] : memref<1x256xf32, #tpu.memory_space<vmem>>, vector<1x256xf32>
    %19 = vector.broadcast %18 : vector<1x256xf32> to vector<2x256xf32>
    %20 = arith.addf %17, %19 : vector<2x256xf32>
    %cst_11 = arith.constant 0.000000e+00 : f32
    %21 = vector.broadcast %cst_11 : f32 to vector<2x256xf32>
    %22 = arith.maximumf %20, %21 : vector<2x256xf32>
    %c0_12 = arith.constant 0 : index
    %c0_13 = arith.constant 0 : index
    %23 = vector.load %arg5[%c0_12, %c0_13] : memref<256x32xbf16, #tpu.memory_space<vmem>>, vector<256x32xbf16>
    %24 = arith.truncf %22 : vector<2x256xf32> to vector<2x256xbf16>
    %cst_14 = arith.constant dense<0.000000e+00> : vector<2x32xf32>
    %25 = tpu.matmul %24, %23, %cst_14 {dimension_numbers = #tpu.dot_dimension_numbers<[1], [0], [0], [1], [0, 0, 1, 1], [], []>} : vector<2x256xbf16>, vector<256x32xbf16>, vector<2x32xf32> -> vector<2x32xf32>
    %c0_15 = arith.constant 0 : index
    %c0_16 = arith.constant 0 : index
    %26 = vector.load %arg6[%c0_15, %c0_16] : memref<1x32xf32, #tpu.memory_space<vmem>>, vector<1x32xf32>
    %27 = vector.broadcast %26 : vector<1x32xf32> to vector<2x32xf32>
    %28 = arith.addf %25, %27 : vector<2x32xf32>
    %c0_17 = arith.constant 0 : index
    %c0_18 = arith.constant 0 : index
    %29 = vector.load %arg7[%c0_17, %c0_18] : memref<16x32xf32, #tpu.memory_space<vmem>>, vector<16x32xf32>
    %c0_19 = arith.constant 0 : index
    %c0_20 = arith.constant 0 : index
    %30 = vector.load %arg8[%c0_19, %c0_20] : memref<32x16xf32, #tpu.memory_space<vmem>>, vector<32x16xf32>
    %cst_21 = arith.constant dense<0.000000e+00> : vector<2x16xf32>
    %31 = tpu.matmul %28, %30, %cst_21 {dimension_numbers = #tpu.dot_dimension_numbers<[1], [0], [0], [1], [0, 0, 1, 1], [], []>} : vector<2x32xf32>, vector<32x16xf32>, vector<2x16xf32> -> vector<2x16xf32>
    %c0_22 = arith.constant 0 : index
    %c0_23 = arith.constant 0 : index
    %32 = vector.load %arg9[%c0_22, %c0_23] : memref<1x16xf32, #tpu.memory_space<vmem>>, vector<1x16xf32>
    %cst_24 = arith.constant 2.000000e+00 : f32
    %33 = vector.broadcast %cst_24 : f32 to vector<2x16xf32>
    %34 = arith.mulf %33, %31 : vector<2x16xf32>
    %35 = vector.broadcast %32 : vector<1x16xf32> to vector<2x16xf32>
    %36 = arith.subf %35, %34 : vector<2x16xf32>
    %37 = tpu.iota {dimensions = array<i32: 1>} : vector<2x16xi32>
    %cst_25 = arith.constant dense<0x7F800000> : vector<2xf32>
    %38 = vector.multi_reduction <minimumf>, %36, %cst_25 [1] : vector<2x16xf32> to vector<2xf32>
    %39 = vector.shape_cast %38 : vector<2xf32> to vector<2x1xf32>
    %40 = vector.broadcast %39 : vector<2x1xf32> to vector<2x16xf32>
    %41 = arith.cmpf oeq, %36, %40 : vector<2x16xf32>
    %c16_i32 = arith.constant 16 : i32
    %42 = vector.broadcast %c16_i32 : i32 to vector<2x16xi32>
    %43 = arith.select %41, %37, %42 : vector<2x16xi1>, vector<2x16xi32>
    %cst_26 = arith.constant dense<2147483647> : vector<2xi32>
    %44 = vector.multi_reduction <minsi>, %43, %cst_26 [1] : vector<2x16xi32> to vector<2xi32>
    %45 = vector.shape_cast %44 : vector<2xi32> to vector<2x1xi32>
    %46 = vector.broadcast %45 : vector<2x1xi32> to vector<2x16xi32>
    %47 = arith.cmpi eq, %37, %46 : vector<2x16xi32>
    %48 = arith.extui %47 : vector<2x16xi1> to vector<2x16xi32>
    %49 = arith.sitofp %48 : vector<2x16xi32> to vector<2x16xf32>
    %cst_27 = arith.constant dense<0.000000e+00> : vector<2x32xf32>
    %50 = tpu.matmul %49, %29, %cst_27 {dimension_numbers = #tpu.dot_dimension_numbers<[1], [0], [0], [1], [0, 0, 1, 1], [], []>} : vector<2x16xf32>, vector<16x32xf32>, vector<2x32xf32> -> vector<2x32xf32>
    %51 = arith.subf %50, %28 : vector<2x32xf32>
    %52 = arith.mulf %51, %51 : vector<2x32xf32>
    %53 = vector.shape_cast %52 : vector<2x32xf32> to vector<1x2x32xf32>
    %cst_28 = arith.constant dense<0.000000e+00> : vector<1xf32>
    %54 = vector.multi_reduction <add>, %53, %cst_28 [1, 2] : vector<1x2x32xf32> to vector<1xf32>
    %55 = vector.shape_cast %54 : vector<1xf32> to vector<1x1x1xf32>
    %56 = vector.extract %55[0, 0, 0] : f32 from vector<1x1x1xf32>
    %cst_29 = arith.constant 6.400000e+01 : f32
    %57 = arith.divf %56, %cst_29 : f32
    %cst_30 = arith.constant 2.500000e-01 : f32
    %58 = arith.mulf %cst_30, %57 : f32
    %59 = vector.broadcast %58 : f32 to vector<1x1xf32>
    %c0_31 = arith.constant 0 : index
    %c0_32 = arith.constant 0 : index
    %60 = vector.load %arg34[%c0_31, %c0_32] : memref<1x1xf32, #tpu.memory_space<vmem>>, vector<1x1xf32>
    tpu.vector_store %arg34[%c0_31, %c0_32], %59 {strides = array<i32>} : memref<1x1xf32, #tpu.memory_space<vmem>>, vector<1x1xf32>,
    %c0_33 = arith.constant 0 : index
    %c0_34 = arith.constant 0 : index
    %61 = vector.load %arg33[%c0_33, %c0_34] : memref<2x1xi32, #tpu.memory_space<vmem>>, vector<2x1xi32>
    tpu.vector_store %arg33[%c0_33, %c0_34], %45 {strides = array<i32>} : memref<2x1xi32, #tpu.memory_space<vmem>>, vector<2x1xi32>,
    %c0_i32_35 = arith.constant 0 : i32
    %62 = tpu.memref_slice %arg38[%c0_i32_35] : memref<3x!tpu.dma_semaphore, #tpu.memory_space<semaphore_mem>> -> memref<1x!tpu.dma_semaphore, #tpu.memory_space<semaphore_mem>>
    %63 = tpu.memref_squeeze %62 : memref<1x!tpu.dma_semaphore, #tpu.memory_space<semaphore_mem>> -> memref<!tpu.dma_semaphore, #tpu.memory_space<semaphore_mem>>
    tpu.wait_dma2 semaphore(%63 : memref<!tpu.dma_semaphore, #tpu.memory_space<semaphore_mem>>) src(%arg10 : memref<32x256xbf16, #tpu.memory_space<any>>) dst(%arg35 : memref<32x256xbf16, #tpu.memory_space<vmem>>)
    %c1_i32_36 = arith.constant 1 : i32
    %64 = tpu.memref_slice %arg38[%c1_i32_36] : memref<3x!tpu.dma_semaphore, #tpu.memory_space<semaphore_mem>> -> memref<1x!tpu.dma_semaphore, #tpu.memory_space<semaphore_mem>>
    %65 = tpu.memref_squeeze %64 : memref<1x!tpu.dma_semaphore, #tpu.memory_space<semaphore_mem>> -> memref<!tpu.dma_semaphore, #tpu.memory_space<semaphore_mem>>
    tpu.wait_dma2 semaphore(%65 : memref<!tpu.dma_semaphore, #tpu.memory_space<semaphore_mem>>) src(%arg11 : memref<256x512xbf16, #tpu.memory_space<any>>) dst(%arg36 : memref<256x512xbf16, #tpu.memory_space<vmem>>)
    %c2_i32_37 = arith.constant 2 : i32
    %66 = tpu.memref_slice %arg38[%c2_i32_37] : memref<3x!tpu.dma_semaphore, #tpu.memory_space<semaphore_mem>> -> memref<1x!tpu.dma_semaphore, #tpu.memory_space<semaphore_mem>>
    %67 = tpu.memref_squeeze %66 : memref<1x!tpu.dma_semaphore, #tpu.memory_space<semaphore_mem>> -> memref<!tpu.dma_semaphore, #tpu.memory_space<semaphore_mem>>
    tpu.wait_dma2 semaphore(%67 : memref<!tpu.dma_semaphore, #tpu.memory_space<semaphore_mem>>) src(%arg12 : memref<512x64xbf16, #tpu.memory_space<any>>) dst(%arg37 : memref<512x64xbf16, #tpu.memory_space<vmem>>)
    %c0_38 = arith.constant 0 : index
    %c0_39 = arith.constant 0 : index
    %68 = vector.load %arg35[%c0_38, %c0_39] : memref<32x256xbf16, #tpu.memory_space<vmem>>, vector<32x256xbf16>
    %69 = arith.truncf %50 : vector<2x32xf32> to vector<2x32xbf16>
    %cst_40 = arith.constant dense<0.000000e+00> : vector<2x256xf32>
    %70 = tpu.matmul %69, %68, %cst_40 {dimension_numbers = #tpu.dot_dimension_numbers<[1], [0], [0], [1], [0, 0, 1, 1], [], []>} : vector<2x32xbf16>, vector<32x256xbf16>, vector<2x256xf32> -> vector<2x256xf32>
    %c0_41 = arith.constant 0 : index
    %c0_42 = arith.constant 0 : index
    %71 = vector.load %arg13[%c0_41, %c0_42] : memref<1x256xf32, #tpu.memory_space<vmem>>, vector<1x256xf32>
    %72 = vector.broadcast %71 : vector<1x256xf32> to vector<2x256xf32>
    %73 = arith.addf %70, %72 : vector<2x256xf32>
    %cst_43 = arith.constant 0.000000e+00 : f32
    %74 = vector.broadcast %cst_43 : f32 to vector<2x256xf32>
    %75 = arith.maximumf %73, %74 : vector<2x256xf32>
    %c0_44 = arith.constant 0 : index
    %c0_45 = arith.constant 0 : index
    %76 = vector.load %arg36[%c0_44, %c0_45] : memref<256x512xbf16, #tpu.memory_space<vmem>>, vector<256x512xbf16>
    %77 = arith.truncf %75 : vector<2x256xf32> to vector<2x256xbf16>
    %cst_46 = arith.constant dense<0.000000e+00> : vector<2x512xf32>
    %78 = tpu.matmul %77, %76, %cst_46 {dimension_numbers = #tpu.dot_dimension_numbers<[1], [0], [0], [1], [0, 0, 1, 1], [], []>} : vector<2x256xbf16>, vector<256x512xbf16>, vector<2x512xf32> -> vector<2x512xf32>
    %c0_47 = arith.constant 0 : index
    %c0_48 = arith.constant 0 : index
    %79 = vector.load %arg14[%c0_47, %c0_48] : memref<1x512xf32, #tpu.memory_space<vmem>>, vector<1x512xf32>
    %80 = vector.broadcast %79 : vector<1x512xf32> to vector<2x512xf32>
    %81 = arith.addf %78, %80 : vector<2x512xf32>
    %cst_49 = arith.constant 0.000000e+00 : f32
    %82 = vector.broadcast %cst_49 : f32 to vector<2x512xf32>
    %83 = arith.maximumf %81, %82 : vector<2x512xf32>
    %c0_50 = arith.constant 0 : index
    %c0_51 = arith.constant 0 : index
    %84 = vector.load %arg37[%c0_50, %c0_51] : memref<512x64xbf16, #tpu.memory_space<vmem>>, vector<512x64xbf16>
    %85 = arith.truncf %83 : vector<2x512xf32> to vector<2x512xbf16>
    %cst_52 = arith.constant dense<0.000000e+00> : vector<2x64xf32>
    %86 = tpu.matmul %85, %84, %cst_52 {dimension_numbers = #tpu.dot_dimension_numbers<[1], [0], [0], [1], [0, 0, 1, 1], [], []>} : vector<2x512xbf16>, vector<512x64xbf16>, vector<2x64xf32> -> vector<2x64xf32>
    %c0_53 = arith.constant 0 : index
    %c0_54 = arith.constant 0 : index
    %87 = vector.load %arg15[%c0_53, %c0_54] : memref<1x64xf32, #tpu.memory_space<vmem>>, vector<1x64xf32>
    %88 = vector.broadcast %87 : vector<1x64xf32> to vector<2x64xf32>
    %89 = arith.addf %86, %88 : vector<2x64xf32>
    %90 = math.tanh %89 : vector<2x64xf32>
    %91 = tpu.concatenate %28, %90 in 1 : vector<2x32xf32>, vector<2x64xf32> -> vector<2x96xf32>
    %c0_55 = arith.constant 0 : index
    %c0_56 = arith.constant 0 : index
    %92 = vector.load %arg32[%c0_55, %c0_56] : memref<2x96xf32, #tpu.memory_space<vmem>>, vector<2x96xf32>
    tpu.vector_store %arg32[%c0_55, %c0_56], %91 {strides = array<i32>} : memref<2x96xf32, #tpu.memory_space<vmem>>, vector<2x96xf32>,
    %93 = tpu.iota {dimensions = array<i32: 1>} : vector<1x128xi32>
    %c63_i32 = arith.constant 63 : i32
    %94 = vector.broadcast %c63_i32 : i32 to vector<1x128xi32>
    %95 = arith.andi %93, %94 : vector<1x128xi32>
    %96 = vector.extract_strided_slice %90 {offsets = [0, 0], sizes = [1, 64], strides = [1, 1]} : vector<2x64xf32> to vector<1x64xf32>
    %97 = vector.extract_strided_slice %90 {offsets = [1, 0], sizes = [1, 64], strides = [1, 1]} : vector<2x64xf32> to vector<1x64xf32>
    %98 = tpu.concatenate %96, %97 in 1 : vector<1x64xf32>, vector<1x64xf32> -> vector<1x128xf32>
    %c1_i32_57 = arith.constant 1 : i32
    %99 = tpu.dynamic_rotate %98 by %c1_i32_57 dim 1 : vector<1x128xf32>, i32 -> vector<1x128xf32>
    %c1_i32_58 = arith.constant 1 : i32
    %100 = vector.broadcast %c1_i32_58 : i32 to vector<1x128xi32>
    %101 = arith.cmpi sge, %95, %100 : vector<1x128xi32>
    %cst_59 = arith.constant 0.000000e+00 : f32
    %102 = vector.broadcast %cst_59 : f32 to vector<1x128xf32>
    %103 = arith.select %101, %99, %102 : vector<1x128xi1>, vector<1x128xf32>
    %c127_i32 = arith.constant 127 : i32
    %104 = tpu.dynamic_rotate %98 by %c127_i32 dim 1 : vector<1x128xf32>, i32 -> vector<1x128xf32>
    %c63_i32_60 = arith.constant 63 : i32
    %105 = vector.broadcast %c63_i32_60 : i32 to vector<1x128xi32>
    %106 = arith.cmpi slt, %95, %105 : vector<1x128xi32>
    %cst_61 = arith.constant 0.000000e+00 : f32
    %107 = vector.broadcast %cst_61 : f32 to vector<1x128xf32>
    %108 = arith.select %106, %104, %107 : vector<1x128xi1>, vector<1x128xf32>
    %c0_62 = arith.constant 0 : index
    %c0_63 = arith.constant 0 : index
    %109 = vector.load %arg16[%c0_62, %c0_63] : memref<16x3xf32, #tpu.memory_space<vmem>>, vector<16x3xf32>
    %110 = vector.extract_strided_slice %109 {offsets = [0, 0], sizes = [16, 1], strides = [1, 1]} : vector<16x3xf32> to vector<16x1xf32>
    %111 = vector.broadcast %110 : vector<16x1xf32> to vector<16x128xf32>
    %112 = vector.broadcast %103 : vector<1x128xf32> to vector<16x128xf32>
    %113 = arith.mulf %111, %112 : vector<16x128xf32>
    %114 = vector.extract_strided_slice %109 {offsets = [0, 1], sizes = [16, 1], strides = [1, 1]} : vector<16x3xf32> to vector<16x1xf32>
    %115 = vector.broadcast %114 : vector<16x1xf32> to vector<16x128xf32>
    %116 = vector.broadcast %98 : vector<1x128xf32> to vector<16x128xf32>
    %117 = arith.mulf %115, %116 : vector<16x128xf32>
    %118 = arith.addf %113, %117 : vector<16x128xf32>
    %119 = vector.extract_strided_slice %109 {offsets = [0, 2], sizes = [16, 1], strides = [1, 1]} : vector<16x3xf32> to vector<16x1xf32>
    %120 = vector.broadcast %119 : vector<16x1xf32> to vector<16x128xf32>
    %121 = vector.broadcast %108 : vector<1x128xf32> to vector<16x128xf32>
    %122 = arith.mulf %120, %121 : vector<16x128xf32>
    %123 = arith.addf %118, %122 : vector<16x128xf32>
    %c0_64 = arith.constant 0 : index
    %c0_65 = arith.constant 0 : index
    %124 = vector.load %arg17[%c0_64, %c0_65] : memref<16x1xf32, #tpu.memory_space<vmem>>, vector<16x1xf32>
    %125 = vector.broadcast %124 : vector<16x1xf32> to vector<16x128xf32>
    %126 = arith.addf %123, %125 : vector<16x128xf32>
    %cst_66 = arith.constant 0.000000e+00 : f32
    %127 = vector.broadcast %cst_66 : f32 to vector<16x128xf32>
    %128 = arith.maximumf %126, %127 : vector<16x128xf32>
    %c2_i32_67 = arith.constant 2 : i32
    %129 = tpu.dynamic_rotate %128 by %c2_i32_67 dim 1 : vector<16x128xf32>, i32 -> vector<16x128xf32>
    %c2_i32_68 = arith.constant 2 : i32
    %130 = vector.broadcast %c2_i32_68 : i32 to vector<1x128xi32>
    %131 = arith.cmpi sge, %95, %130 : vector<1x128xi32>
    %cst_69 = arith.constant 0.000000e+00 : f32
    %132 = vector.shape_cast %131 : vector<1x128xi1> to vector<1x128xi1>
    %133 = vector.broadcast %132 : vector<1x128xi1> to vector<16x128xi1>
    %134 = vector.broadcast %cst_69 : f32 to vector<16x128xf32>
    %135 = arith.select %133, %129, %134 : vector<16x128xi1>, vector<16x128xf32>
    %c126_i32 = arith.constant 126 : i32
    %136 = tpu.dynamic_rotate %128 by %c126_i32 dim 1 : vector<16x128xf32>, i32 -> vector<16x128xf32>
    %c62_i32 = arith.constant 62 : i32
    %137 = vector.broadcast %c62_i32 : i32 to vector<1x128xi32>
    %138 = arith.cmpi slt, %95, %137 : vector<1x128xi32>
    %cst_70 = arith.constant 0.000000e+00 : f32
    %139 = vector.shape_cast %138 : vector<1x128xi1> to vector<1x128xi1>
    %140 = vector.broadcast %139 : vector<1x128xi1> to vector<16x128xi1>
    %141 = vector.broadcast %cst_70 : f32 to vector<16x128xf32>
    %142 = arith.select %140, %136, %141 : vector<16x128xi1>, vector<16x128xf32>
    %c0_71 = arith.constant 0 : index
    %c0_72 = arith.constant 0 : index
    %143 = vector.load %arg18[%c0_71, %c0_72] : memref<32x48xf32, #tpu.memory_space<vmem>>, vector<32x48xf32>
    %144 = tpu.concatenate %135, %128, %142 in 0 : vector<16x128xf32>, vector<16x128xf32>, vector<16x128xf32> -> vector<48x128xf32>
    %cst_73 = arith.constant dense<0.000000e+00> : vector<32x128xf32>
    %145 = tpu.matmul %143, %144, %cst_73 {dimension_numbers = #tpu.dot_dimension_numbers<[1], [0], [0], [1], [0, 0, 1, 1], [], []>} : vector<32x48xf32>, vector<48x128xf32>, vector<32x128xf32> -> vector<32x128xf32>
    %c0_74 = arith.constant 0 : index
    %c0_75 = arith.constant 0 : index
    %146 = vector.load %arg19[%c0_74, %c0_75] : memref<32x1xf32, #tpu.memory_space<vmem>>, vector<32x1xf32>
    %147 = vector.broadcast %146 : vector<32x1xf32> to vector<32x128xf32>
    %148 = arith.addf %145, %147 : vector<32x128xf32>
    %cst_76 = arith.constant 0.000000e+00 : f32
    %149 = vector.broadcast %cst_76 : f32 to vector<32x128xf32>
    %150 = arith.maximumf %148, %149 : vector<32x128xf32>
    %c4_i32 = arith.constant 4 : i32
    %151 = tpu.dynamic_rotate %150 by %c4_i32 dim 1 : vector<32x128xf32>, i32 -> vector<32x128xf32>
    %c4_i32_77 = arith.constant 4 : i32
    %152 = vector.broadcast %c4_i32_77 : i32 to vector<1x128xi32>
    %153 = arith.cmpi sge, %95, %152 : vector<1x128xi32>
    %cst_78 = arith.constant 0.000000e+00 : f32
    %154 = vector.shape_cast %153 : vector<1x128xi1> to vector<1x128xi1>
    %155 = vector.broadcast %154 : vector<1x128xi1> to vector<32x128xi1>
    %156 = vector.broadcast %cst_78 : f32 to vector<32x128xf32>
    %157 = arith.select %155, %151, %156 : vector<32x128xi1>, vector<32x128xf32>
    %c124_i32 = arith.constant 124 : i32
    %158 = tpu.dynamic_rotate %150 by %c124_i32 dim 1 : vector<32x128xf32>, i32 -> vector<32x128xf32>
    %c60_i32 = arith.constant 60 : i32
    %159 = vector.broadcast %c60_i32 : i32 to vector<1x128xi32>
    %160 = arith.cmpi slt, %95, %159 : vector<1x128xi32>
    %cst_79 = arith.constant 0.000000e+00 : f32
    %161 = vector.shape_cast %160 : vector<1x128xi1> to vector<1x128xi1>
    %162 = vector.broadcast %161 : vector<1x128xi1> to vector<32x128xi1>
    %163 = vector.broadcast %cst_79 : f32 to vector<32x128xf32>
    %164 = arith.select %162, %158, %163 : vector<32x128xi1>, vector<32x128xf32>
    %c0_80 = arith.constant 0 : index
    %c0_81 = arith.constant 0 : index
    %165 = vector.load %arg20[%c0_80, %c0_81] : memref<8x96xf32, #tpu.memory_space<vmem>>, vector<8x96xf32>
    %166 = tpu.concatenate %157, %150, %164 in 0 : vector<32x128xf32>, vector<32x128xf32>, vector<32x128xf32> -> vector<96x128xf32>
    %cst_82 = arith.constant dense<0.000000e+00> : vector<8x128xf32>
    %167 = tpu.matmul %165, %166, %cst_82 {dimension_numbers = #tpu.dot_dimension_numbers<[1], [0], [0], [1], [0, 0, 1, 1], [], []>} : vector<8x96xf32>, vector<96x128xf32>, vector<8x128xf32> -> vector<8x128xf32>
    %c0_83 = arith.constant 0 : index
    %c0_84 = arith.constant 0 : index
    %168 = vector.load %arg21[%c0_83, %c0_84] : memref<8x1xf32, #tpu.memory_space<vmem>>, vector<8x1xf32>
    %169 = vector.broadcast %168 : vector<8x1xf32> to vector<8x128xf32>
    %170 = arith.addf %167, %169 : vector<8x128xf32>
    %cst_85 = arith.constant 0.000000e+00 : f32
    %171 = vector.broadcast %cst_85 : f32 to vector<8x128xf32>
    %172 = arith.maximumf %170, %171 : vector<8x128xf32>
    %c0_86 = arith.constant 0 : index
    %c0_87 = arith.constant 0 : index
    %173 = vector.load %arg22[%c0_86, %c0_87] : memref<32x8xf32, #tpu.memory_space<vmem>>, vector<32x8xf32>
    %cst_88 = arith.constant dense<0.000000e+00> : vector<32x128xf32>
    %174 = tpu.matmul %173, %172, %cst_88 {dimension_numbers = #tpu.dot_dimension_numbers<[1], [0], [0], [1], [0, 0, 1, 1], [], []>} : vector<32x8xf32>, vector<8x128xf32>, vector<32x128xf32> -> vector<32x128xf32>
    %c0_89 = arith.constant 0 : index
    %c0_90 = arith.constant 0 : index
    %175 = vector.load %arg23[%c0_89, %c0_90] : memref<32x16xf32, #tpu.memory_space<vmem>>, vector<32x16xf32>
    %c4_i32_91 = arith.constant 4 : i32
    %176 = tpu.dynamic_rotate %172 by %c4_i32_91 dim 1 : vector<8x128xf32>, i32 -> vector<8x128xf32>
    %c4_i32_92 = arith.constant 4 : i32
    %177 = vector.broadcast %c4_i32_92 : i32 to vector<1x128xi32>
    %178 = arith.cmpi sge, %95, %177 : vector<1x128xi32>
    %cst_93 = arith.constant 0.000000e+00 : f32
    %179 = vector.shape_cast %178 : vector<1x128xi1> to vector<1x128xi1>
    %180 = vector.broadcast %179 : vector<1x128xi1> to vector<8x128xi1>
    %181 = vector.broadcast %cst_93 : f32 to vector<8x128xf32>
    %182 = arith.select %180, %176, %181 : vector<8x128xi1>, vector<8x128xf32>
    %c124_i32_94 = arith.constant 124 : i32
    %183 = tpu.dynamic_rotate %172 by %c124_i32_94 dim 1 : vector<8x128xf32>, i32 -> vector<8x128xf32>
    %c60_i32_95 = arith.constant 60 : i32
    %184 = vector.broadcast %c60_i32_95 : i32 to vector<1x128xi32>
    %185 = arith.cmpi slt, %95, %184 : vector<1x128xi32>
    %cst_96 = arith.constant 0.000000e+00 : f32
    %186 = vector.shape_cast %185 : vector<1x128xi1> to vector<1x128xi1>
    %187 = vector.broadcast %186 : vector<1x128xi1> to vector<8x128xi1>
    %188 = vector.broadcast %cst_96 : f32 to vector<8x128xf32>
    %189 = arith.select %187, %183, %188 : vector<8x128xi1>, vector<8x128xf32>
    %190 = tpu.concatenate %182, %189 in 0 : vector<8x128xf32>, vector<8x128xf32> -> vector<16x128xf32>
    %cst_97 = arith.constant dense<0.000000e+00> : vector<32x128xf32>
    %191 = tpu.matmul %175, %190, %cst_97 {dimension_numbers = #tpu.dot_dimension_numbers<[1], [0], [0], [1], [0, 0, 1, 1], [], []>} : vector<32x16xf32>, vector<16x128xf32>, vector<32x128xf32> -> vector<32x128xf32>
    %c7_i32 = arith.constant 7 : i32
    %192 = vector.broadcast %c7_i32 : i32 to vector<1x128xi32>
    %193 = arith.andi %95, %192 : vector<1x128xi32>
    %c0_i32_98 = arith.constant 0 : i32
    %194 = vector.broadcast %c0_i32_98 : i32 to vector<1x128xi32>
    %195 = arith.cmpi eq, %193, %194 : vector<1x128xi32>
    %196 = vector.shape_cast %195 : vector<1x128xi1> to vector<1x128xi1>
    %197 = vector.broadcast %196 : vector<1x128xi1> to vector<32x128xi1>
    %198 = arith.select %197, %174, %191 : vector<32x128xi1>, vector<32x128xf32>
    %c0_99 = arith.constant 0 : index
    %c0_100 = arith.constant 0 : index
    %199 = vector.load %arg24[%c0_99, %c0_100] : memref<32x1xf32, #tpu.memory_space<vmem>>, vector<32x1xf32>
    %200 = vector.broadcast %199 : vector<32x1xf32> to vector<32x128xf32>
    %201 = arith.addf %198, %200 : vector<32x128xf32>
    %cst_101 = arith.constant 0.000000e+00 : f32
    %202 = vector.broadcast %cst_101 : f32 to vector<32x128xf32>
    %203 = arith.maximumf %201, %202 : vector<32x128xf32>
    %c0_102 = arith.constant 0 : index
    %c0_103 = arith.constant 0 : index
    %204 = vector.load %arg25[%c0_102, %c0_103] : memref<16x32xf32, #tpu.memory_space<vmem>>, vector<16x32xf32>
    %cst_104 = arith.constant dense<0.000000e+00> : vector<16x128xf32>
    %205 = tpu.matmul %204, %203, %cst_104 {dimension_numbers = #tpu.dot_dimension_numbers<[1], [0], [0], [1], [0, 0, 1, 1], [], []>} : vector<16x32xf32>, vector<32x128xf32>, vector<16x128xf32> -> vector<16x128xf32>
    %c0_105 = arith.constant 0 : index
    %c0_106 = arith.constant 0 : index
    %206 = vector.load %arg26[%c0_105, %c0_106] : memref<16x64xf32, #tpu.memory_space<vmem>>, vector<16x64xf32>
    %c2_i32_107 = arith.constant 2 : i32
    %207 = tpu.dynamic_rotate %203 by %c2_i32_107 dim 1 : vector<32x128xf32>, i32 -> vector<32x128xf32>
    %c2_i32_108 = arith.constant 2 : i32
    %208 = vector.broadcast %c2_i32_108 : i32 to vector<1x128xi32>
    %209 = arith.cmpi sge, %95, %208 : vector<1x128xi32>
    %cst_109 = arith.constant 0.000000e+00 : f32
    %210 = vector.shape_cast %209 : vector<1x128xi1> to vector<1x128xi1>
    %211 = vector.broadcast %210 : vector<1x128xi1> to vector<32x128xi1>
    %212 = vector.broadcast %cst_109 : f32 to vector<32x128xf32>
    %213 = arith.select %211, %207, %212 : vector<32x128xi1>, vector<32x128xf32>
    %c126_i32_110 = arith.constant 126 : i32
    %214 = tpu.dynamic_rotate %203 by %c126_i32_110 dim 1 : vector<32x128xf32>, i32 -> vector<32x128xf32>
    %c62_i32_111 = arith.constant 62 : i32
    %215 = vector.broadcast %c62_i32_111 : i32 to vector<1x128xi32>
    %216 = arith.cmpi slt, %95, %215 : vector<1x128xi32>
    %cst_112 = arith.constant 0.000000e+00 : f32
    %217 = vector.shape_cast %216 : vector<1x128xi1> to vector<1x128xi1>
    %218 = vector.broadcast %217 : vector<1x128xi1> to vector<32x128xi1>
    %219 = vector.broadcast %cst_112 : f32 to vector<32x128xf32>
    %220 = arith.select %218, %214, %219 : vector<32x128xi1>, vector<32x128xf32>
    %221 = tpu.concatenate %213, %220 in 0 : vector<32x128xf32>, vector<32x128xf32> -> vector<64x128xf32>
    %cst_113 = arith.constant dense<0.000000e+00> : vector<16x128xf32>
    %222 = tpu.matmul %206, %221, %cst_113 {dimension_numbers = #tpu.dot_dimension_numbers<[1], [0], [0], [1], [0, 0, 1, 1], [], []>} : vector<16x64xf32>, vector<64x128xf32>, vector<16x128xf32> -> vector<16x128xf32>
    %c3_i32 = arith.constant 3 : i32
    %223 = vector.broadcast %c3_i32 : i32 to vector<1x128xi32>
    %224 = arith.andi %95, %223 : vector<1x128xi32>
    %c0_i32_114 = arith.constant 0 : i32
    %225 = vector.broadcast %c0_i32_114 : i32 to vector<1x128xi32>
    %226 = arith.cmpi eq, %224, %225 : vector<1x128xi32>
    %227 = vector.shape_cast %226 : vector<1x128xi1> to vector<1x128xi1>
    %228 = vector.broadcast %227 : vector<1x128xi1> to vector<16x128xi1>
    %229 = arith.select %228, %205, %222 : vector<16x128xi1>, vector<16x128xf32>
    %c0_115 = arith.constant 0 : index
    %c0_116 = arith.constant 0 : index
    %230 = vector.load %arg27[%c0_115, %c0_116] : memref<16x1xf32, #tpu.memory_space<vmem>>, vector<16x1xf32>
    %231 = vector.broadcast %230 : vector<16x1xf32> to vector<16x128xf32>
    %232 = arith.addf %229, %231 : vector<16x128xf32>
    %cst_117 = arith.constant 0.000000e+00 : f32
    %233 = vector.broadcast %cst_117 : f32 to vector<16x128xf32>
    %234 = arith.maximumf %232, %233 : vector<16x128xf32>
    %c0_118 = arith.constant 0 : index
    %c0_119 = arith.constant 0 : index
    %235 = vector.load %arg28[%c0_118, %c0_119] : memref<1x16xf32, #tpu.memory_space<vmem>>, vector<1x16xf32>
    %cst_120 = arith.constant dense<0.000000e+00> : vector<1x128xf32>
    %236 = tpu.matmul %235, %234, %cst_120 {dimension_numbers = #tpu.dot_dimension_numbers<[1], [0], [0], [1], [0, 0, 1, 1], [], []>} : vector<1x16xf32>, vector<16x128xf32>, vector<1x128xf32> -> vector<1x128xf32>
    %c0_121 = arith.constant 0 : index
    %c0_122 = arith.constant 0 : index
    %237 = vector.load %arg29[%c0_121, %c0_122] : memref<1x32xf32, #tpu.memory_space<vmem>>, vector<1x32xf32>
    %c1_i32_123 = arith.constant 1 : i32
    %238 = tpu.dynamic_rotate %234 by %c1_i32_123 dim 1 : vector<16x128xf32>, i32 -> vector<16x128xf32>
    %c1_i32_124 = arith.constant 1 : i32
    %239 = vector.broadcast %c1_i32_124 : i32 to vector<1x128xi32>
    %240 = arith.cmpi sge, %95, %239 : vector<1x128xi32>
    %cst_125 = arith.constant 0.000000e+00 : f32
    %241 = vector.shape_cast %240 : vector<1x128xi1> to vector<1x128xi1>
    %242 = vector.broadcast %241 : vector<1x128xi1> to vector<16x128xi1>
    %243 = vector.broadcast %cst_125 : f32 to vector<16x128xf32>
    %244 = arith.select %242, %238, %243 : vector<16x128xi1>, vector<16x128xf32>
    %c127_i32_126 = arith.constant 127 : i32
    %245 = tpu.dynamic_rotate %234 by %c127_i32_126 dim 1 : vector<16x128xf32>, i32 -> vector<16x128xf32>
    %c63_i32_127 = arith.constant 63 : i32
    %246 = vector.broadcast %c63_i32_127 : i32 to vector<1x128xi32>
    %247 = arith.cmpi slt, %95, %246 : vector<1x128xi32>
    %cst_128 = arith.constant 0.000000e+00 : f32
    %248 = vector.shape_cast %247 : vector<1x128xi1> to vector<1x128xi1>
    %249 = vector.broadcast %248 : vector<1x128xi1> to vector<16x128xi1>
    %250 = vector.broadcast %cst_128 : f32 to vector<16x128xf32>
    %251 = arith.select %249, %245, %250 : vector<16x128xi1>, vector<16x128xf32>
    %252 = tpu.concatenate %244, %251 in 0 : vector<16x128xf32>, vector<16x128xf32> -> vector<32x128xf32>
    %cst_129 = arith.constant dense<0.000000e+00> : vector<1x128xf32>
    %253 = tpu.matmul %237, %252, %cst_129 {dimension_numbers = #tpu.dot_dimension_numbers<[1], [0], [0], [1], [0, 0, 1, 1], [], []>} : vector<1x32xf32>, vector<32x128xf32>, vector<1x128xf32> -> vector<1x128xf32>
    %c1_i32_130 = arith.constant 1 : i32
    %254 = vector.broadcast %c1_i32_130 : i32 to vector<1x128xi32>
    %255 = arith.andi %95, %254 : vector<1x128xi32>
    %c0_i32_131 = arith.constant 0 : i32
    %256 = vector.broadcast %c0_i32_131 : i32 to vector<1x128xi32>
    %257 = arith.cmpi eq, %255, %256 : vector<1x128xi32>
    %258 = arith.select %257, %236, %253 : vector<1x128xi1>, vector<1x128xf32>
    %c0_132 = arith.constant 0 : index
    %c0_133 = arith.constant 0 : index
    %259 = vector.load %arg30[%c0_132, %c0_133] : memref<1x1xf32, #tpu.memory_space<vmem>>, vector<1x1xf32>
    %260 = vector.broadcast %259 : vector<1x1xf32> to vector<1x128xf32>
    %261 = arith.addf %258, %260 : vector<1x128xf32>
    %262 = math.tanh %261 : vector<1x128xf32>
    %c0_134 = arith.constant 0 : index
    %c0_135 = arith.constant 0 : index
    %263 = vector.load %arg31[%c0_134, %c0_135] : memref<1x128xf32, #tpu.memory_space<vmem>>, vector<1x128xf32>
    tpu.vector_store %arg31[%c0_134, %c0_135], %262 {strides = array<i32>} : memref<1x128xf32, #tpu.memory_space<vmem>>, vector<1x128xf32>,
    return
  }
}

</mosaic_0001>

<bundles_post_ra>
// kernel: hybrid_forward.1
= control target key start
LH: loop header
LB: loop body
LE: loop exit
PB: predicated region body
PF: predicated region fallthrough
CT: control target
= control target key end

     0   :  { %s3860_s6 = smov 1   ;;  %s3861_s10 = smov 2   ;;  %s4608_s0 = inlined_call_operand.smem [shape: u32[35], index: -1, kind: input, shape index: {}] }
   0x1   :  { %s3927_s5 = sld [smem:[%s4608_s0]]   ;;  %s3862_s14 = smov 3  }
   0x2   :  { %s3932_s9 = sld [smem:[%s4608_s0 + %s3860_s6]]   ;;  %s3863_s18 = smov 4  }
   0x3   :  { %s3937_s13 = sld [smem:[%s4608_s0 + %s3861_s10]]   ;;  %s3864_s22 = smov 5  }
   0x4   :  { %s3942_s17 = sld [smem:[%s4608_s0 + %s3862_s14]]   ;;  %s3865_s26 = smov 6  }
   0x5   :  { %s3947_s21 = sld [smem:[%s4608_s0 + %s3863_s18]]   ;;  %s3866_s30 = smov 7  }
   0x6   :  { %s3952_s25 = sld [smem:[%s4608_s0 + %s3864_s22]]   ;;  %s3867_s4 = smov 8  }
   0x7   :  { %s3957_s29 = sld [smem:[%s4608_s0 + %s3865_s26]]   ;;  %s3868_s10 = smov 9  }
   0x8   :  { %s3962_s3 = sld [smem:[%s4608_s0 + %s3866_s30]]   ;;  %s3869_s15 = smov 10  }
   0x9   :  { %s3967_s8 = sld [smem:[%s4608_s0 + %s3867_s4]]   ;;  %s3870_s20 = smov 11  }
   0xa   :  { %s3972_s14 = sld [smem:[%s4608_s0 + %s3868_s10]]   ;;  %s3871_s26 = smov 12  }
   0xb   :  { %s3977_s19 = sld [smem:[%s4608_s0 + %s3869_s15]]   ;;  %s3872_s1 = smov 13  }
   0xc   :  { %s3982_s24 = sld [smem:[%s4608_s0 + %s3870_s20]]   ;;  %s3873_s7 = smov 14  }
   0xd   :  { %s3987_s30 = sld [smem:[%s4608_s0 + %s3871_s26]]   ;;  %s3874_s15 = smov 15  }
   0xe   :  { %s3992_s6 = sld [smem:[%s4608_s0 + %s3872_s1]]   ;;  %s3875_s22 = smov 16  }
   0xf   :  { %s3997_s12 = sld [smem:[%s4608_s0 + %s3873_s7]]   ;;  %s3876_s28 = smov 17  }
  0x10   :  { %s4002_s20 = sld [smem:[%s4608_s0 + %s3874_s15]]   ;;  %s3877_s7 = smov 18  }
  0x11   :  { %s4007_s27 = sld [smem:[%s4608_s0 + %s3875_s22]]   ;;  %s3878_s15 = smov 19  }
  0x12   :  { %s4012_s4 = sld [smem:[%s4608_s0 + %s3876_s28]]   ;;  %s3879_s22 = smov 20  }
  0x13   :  { %s3880_s28 = smov 21   ;;  %s3890_s16 = smov 31  }
  0x14   :  { %4619 = sst [smem:[#allocation27_spill]] %s3992_s6  ;;  %s3891_s23 = smov 32  }
  0x15   :  { %4620 = sst [smem:[#allocation28_spill]] %s3997_s12  ;;  %s3892_s1 = smov 33  }
  0x16   :  { %4621 = sst [smem:[#allocation29_spill]] %s4002_s20  ;;  %s3893_s10 = smov 34  }
  0x17   :  { %4622 = sst [smem:[#allocation30_spill]] %s4007_s27 }
  0x18   :  { %4623 = sst [smem:[#allocation31_spill]] %s4012_s4 }
  0x19   :  { %s4017_s12 = sld [smem:[%s4608_s0 + %s3877_s7]]   ;;  %s3881_s7 = smov 22  }
  0x1a   :  { %s4022_s20 = sld [smem:[%s4608_s0 + %s3878_s15]]   ;;  %s3882_s15 = smov 23  }
  0x1b   :  { %s4027_s27 = sld [smem:[%s4608_s0 + %s3879_s22]]   ;;  %s3883_s22 = smov 24  }
  0x1c   :  { %s4032_s4 = sld [smem:[%s4608_s0 + %s3880_s28]]   ;;  %s3884_s28 = smov 25  }
  0x1d   :  { %s4095_s6 = sld [smem:[%s4608_s0 + %s3893_s10]]  }
  0x1f   :  { %4624 = sst [smem:[#allocation32_spill]] %s4017_s12 }
  0x20   :  { %4625 = sst [smem:[#allocation33_spill]] %s4022_s20 }
  0x21   :  { %4626 = sst [smem:[#allocation34_spill]] %s4027_s27 }
  0x22   :  { %4627 = sst [smem:[#allocation35_spill]] %s4032_s4 }
  0x23   :  { %s4037_s12 = sld [smem:[%s4608_s0 + %s3881_s7]]   ;;  %s3885_s7 = smov 26  }
  0x24   :  { %s4042_s20 = sld [smem:[%s4608_s0 + %s3882_s15]]   ;;  %s3886_s15 = smov 27  }
  0x25   :  { %s4047_s27 = sld [smem:[%s4608_s0 + %s3883_s22]]   ;;  %s3887_s22 = smov 28  }
  0x26   :  { %s4052_s4 = sld [smem:[%s4608_s0 + %s3884_s28]]   ;;  %s3888_s28 = smov 29  }
  0x29   :  { %4628 = sst [smem:[#allocation36_spill]] %s4037_s12 }
  0x2a   :  { %4629 = sst [smem:[#allocation37_spill]] %s4042_s20 }
  0x2b   :  { %4630 = sst [smem:[#allocation38_spill]] %s4047_s27 }
  0x2c   :  { %4631 = sst [smem:[#allocation39_spill]] %s4052_s4 }
  0x2d   :  { %s4057_s12 = sld [smem:[%s4608_s0 + %s3885_s7]]   ;;  %s3889_s7 = smov 30  }
  0x2e   :  { %s4062_s20 = sld [smem:[%s4608_s0 + %s3886_s15]]  }
  0x2f   :  { %s4067_s27 = sld [smem:[%s4608_s0 + %s3887_s22]]  }
  0x30   :  { %s4072_s4 = sld [smem:[%s4608_s0 + %s3888_s28]]  }
  0x33   :  { %4632 = sst [smem:[#allocation40_spill]] %s4057_s12 }
  0x34   :  { %4633 = sst [smem:[#allocation41_spill]] %s4062_s20 }
  0x35   :  { %4634 = sst [smem:[#allocation42_spill]] %s4067_s27 }
  0x36   :  { %4635 = sst [smem:[#allocation43_spill]] %s4072_s4 }
  0x37   :  { %s2946_s12 = sld [smem:[%s4608_s0 + %s3889_s7]]  }
  0x38   :  { %s4080_s20 = sld [smem:[%s4608_s0 + %s3890_s16]]  }
  0x39   :  { %s4085_s27 = sld [smem:[%s4608_s0 + %s3891_s23]]  }
  0x3a   :  { %s4090_s4 = sld [smem:[%s4608_s0 + %s3892_s1]]  }
  0x3d   :  { %v75_v0 = vstv %s2946_s12 }
  0x3e   :  { %76 = vst [vmem:[#allocation6] sm:$0x1] %v75_v0 }
  0x3f   :  { %77 = vsyncpa [#allocation8], 0 }
  0x40   :  { %78 = vsyncpa [#allocation11], 0 }
  0x41   :  { %79 = vsyncpa [#allocation14], 0 }
  0x42   :  { %80 = vsyncpa [#allocation9], 0  ;;  %s3894_s16 = smov [#allocation10]   ;;  %s3895_s18 = smov [#allocation7]  }
  0x43   :  { %s99_s15 = sshll.u32 %s3894_s16, 4  ;;  %s87_s23 = sshll.u32 %s3895_s18, 4  ;;  %s100_s15 = int_to_ptr.vmem [resolvable:$true] %s99_s15  ;;  %s88_s23 = int_to_ptr.vmem [resolvable:$true] %s87_s23 }
  0x44   :  { %s3736_s22 = scalar_lea.hbm %s3937_s13, 64 }
  0x45   :  { %p3737_p0 = scmp.ne.s32.totalorder %s3937_s13, %s3736_s22  ;;  %p3740_p1 = scmp.lt.u32.totalorder %s3736_s22, %s3937_s13 }
  0x47   :  { %p3742_p2 = pnand %p3740_p1, %p3737_p0 }
  0x49   :  { %3745 = shalt.err (!%p3742_p2)
}
  0x4a   :  { %s3746_s0 = scalar_lea.vmem %s100_s15, 64  ;;  %p3751_p4 = scmp.lt.s32.totalorder %s100_s15, %s100_s15 }
  0x4b   :  { %p3747_p3 = scmp.ne.s32.totalorder %s100_s15, %s3746_s0  ;;  %p3752_p5 = scmp.lt.s32.totalorder %s3746_s0, %s3746_s0 }
  0x4d   :  { %p3753_p6 = por %p3752_p5, %p3751_p4 }
  0x4f   :  { %p3754_p7 = pnand %p3753_p6, %p3747_p3 }
  0x51   :  { %3757 = shalt.err (!%p3754_p7)
}
  0x52   :  { %102 = dma.hbm_to_vmem [thread:$0]  %s3937_s13, 64, %s100_s15, [#allocation11]  }
  0x53   :  { %s3758_s12 = scalar_lea.hbm %s3927_s5, 32 }
  0x54   :  { %p3759_p8 = scmp.ne.s32.totalorder %s3927_s5, %s3758_s12  ;;  %p3762_p9 = scmp.lt.u32.totalorder %s3758_s12, %s3927_s5 }
  0x56   :  { %p3764_p10 = pnand %p3762_p9, %p3759_p8 }
  0x58   :  { %3767 = shalt.err (!%p3764_p10)
}
  0x59   :  { %s3768_s26 = scalar_lea.vmem %s88_s23, 32  ;;  %p3773_p12 = scmp.lt.s32.totalorder %s88_s23, %s88_s23 }
  0x5a   :  { %p3769_p11 = scmp.ne.s32.totalorder %s88_s23, %s3768_s26  ;;  %p3774_p13 = scmp.lt.s32.totalorder %s3768_s26, %s3768_s26 }
  0x5c   :  { %p3775_p0 = por %p3774_p13, %p3773_p12 }
  0x5e   :  { %p3776_p1 = pnand %p3775_p0, %p3769_p11 }
  0x60   :  { %3779 = shalt.err (!%p3776_p1)
}
  0x61   :  { %90 = dma.hbm_to_vmem [thread:$0]  %s3927_s5, 32, %s88_s23, [#allocation8]  }
  0x62   :  { %s3896_s1 = smov [#allocation12]   ;;  %s3897_s13 = smov [#allocation13]  }
  0x63   :  { %s111_s28 = sshll.u32 %s3896_s1, 4  ;;  %s123_s2 = sshll.u32 %s3897_s13, 4  ;;  %s112_s28 = int_to_ptr.vmem [resolvable:$true] %s111_s28  ;;  %s124_s2 = int_to_ptr.vmem [resolvable:$true] %s123_s2 }
  0x64   :  { %s3780_s10 = scalar_lea.hbm %s3947_s21, 32 }
  0x65   :  { %p3781_p2 = scmp.ne.s32.totalorder %s3947_s21, %s3780_s10  ;;  %p3784_p3 = scmp.lt.u32.totalorder %s3780_s10, %s3947_s21 }
  0x67   :  { %p3786_p4 = pnand %p3784_p3, %p3781_p2 }
  0x69   :  { %3789 = shalt.err (!%p3786_p4)
}
  0x6a   :  { %s3790_s7 = scalar_lea.vmem %s112_s28, 32  ;;  %p3795_p6 = scmp.lt.s32.totalorder %s112_s28, %s112_s28 }
  0x6b   :  { %p3791_p5 = scmp.ne.s32.totalorder %s112_s28, %s3790_s7  ;;  %p3796_p7 = scmp.lt.s32.totalorder %s3790_s7, %s3790_s7 }
  0x6d   :  { %p3797_p8 = por %p3796_p7, %p3795_p6 }
  0x6f   :  { %p3798_p9 = pnand %p3797_p8, %p3791_p5 }
  0x71   :  { %3801 = shalt.err (!%p3798_p9)
}
  0x72   :  { %114 = dma.hbm_to_vmem [thread:$0]  %s3947_s21, 32, %s112_s28, [#allocation11]  }
  0x73   :  { %s3802_s5 = scalar_lea.hbm %s3957_s29, 16 }
  0x74   :  { %p3803_p10 = scmp.ne.s32.totalorder %s3957_s29, %s3802_s5  ;;  %p3806_p11 = scmp.lt.u32.totalorder %s3802_s5, %s3957_s29 }
  0x76   :  { %p3808_p12 = pnand %p3806_p11, %p3803_p10 }
  0x78   :  { %3811 = shalt.err (!%p3808_p12)
}
  0x79   :  { %s3812_s11 = scalar_lea.vmem %s124_s2, 16  ;;  %s3816_s16 = scalar_lea.vmem %s124_s2, 32 }
  0x7a   :  { %p3813_p13 = scmp.ne.s32.totalorder %s124_s2, %s3812_s11  ;;  %p3817_p0 = scmp.lt.s32.totalorder %s124_s2, %s124_s2 }
  0x7b   :  { %p3818_p1 = scmp.lt.s32.totalorder %s3816_s16, %s3812_s11 }
  0x7d   :  { %p3819_p2 = por %p3818_p1, %p3817_p0 }
  0x7f   :  { %p3820_p3 = pnand %p3819_p2, %p3813_p13 }
  0x81   :  { %3823 = shalt.err (!%p3820_p3)
}
  0x82   :  { %126 = dma.hbm_to_vmem [thread:$0]  %s3957_s29, 16, %s124_s2, [#allocation14]  }
  0x83   :  { %3846 = dma.done.wait [#allocation8], 32  }
  0x84   :  { %3847 = vsyncadd [#allocation8], 4294967264 }
  0x85   :  { %3848 = dma.done.wait [#allocation11], 96  }
  0x86   :  { %3849 = vsyncadd [#allocation11], 4294967200 }
  0x87   :  { %3850 = dma.done.wait [#allocation14], 16  }
  0x88   :  { %3851 = vsyncadd [#allocation14], 4294967280  ;;  %v199_v1 = vld [vmem:[%s3977_s19] sm:$0xf]  ;;  %v201_v2 = vld [vmem:[%s3977_s19 + $0x8] sm:$0xf] }
  0x89   :  { %v203_v3 = vld [vmem:[%s3977_s19 + $0x4] sm:$0xf]  ;;  %200 = vst [vmem:[#allocation2] sm:$0xf] %v199_v1  ;;  %202 = vst [vmem:[#allocation2 + $0x4] sm:$0xf] %v201_v2 }
  0x8a   :  { %204 = vst [vmem:[#allocation2 + $0x8] sm:$0xf] %v203_v3  ;;  %v205_v4 = vld [vmem:[%s3977_s19 + $0xc] sm:$0xf]  ;;  %v207_v5 = vld [vmem:[%s3977_s19 + $0x10] sm:$0xf] }
  0x8b   :  { %v209_v6 = vld [vmem:[%s3977_s19 + $0x18] sm:$0xf]  ;;  %206 = vst [vmem:[#allocation2 + $0xc] sm:$0xf] %v205_v4  ;;  %208 = vst [vmem:[#allocation2 + $0x10] sm:$0xf] %v207_v5 }
  0x8c   :  { %210 = vst [vmem:[#allocation2 + $0x14] sm:$0xf] %v209_v6  ;;  %v211_v7 = vld [vmem:[%s3977_s19 + $0x14] sm:$0xf]  ;;  %v213_v8 = vld [vmem:[%s3977_s19 + $0x1c] sm:$0xf] }
  0x8d   :  { %212 = vst [vmem:[#allocation2 + $0x18] sm:$0xf] %v211_v7  ;;  %214 = vst [vmem:[#allocation2 + $0x1c] sm:$0xf] %v213_v8 }
  0x8e   :  { %261 = vsyncadd [#allocation5], 512  ;;  %s267_s21 = sld [smem:[#allocation0]]   ;;  %s3898_s29 = smov [#allocation3]  }
  0x8f   :  { %s275_s15 = sshll.u32 %s3898_s29, 4  ;;  %s3899_s18 = smov 512   ;;  %s276_s15 = int_to_ptr.vmem [resolvable:$true] %s275_s15 }
  0x90   :  { %279 = sst [smem:[#allocation18]] %s3899_s18  ;;  %s3900_s23 = smov 4  }
  0x91   :  { %281 = sst [smem:[#allocation18 + $0x1]] %s3899_s18  ;;  %s3901_s22 = smov 64  }
  0x92   :  { %283 = sst [smem:[#allocation18 + $0x2]] %s3900_s23  ;;  %s3902_s0 = smov 128  }
  0x93   :  { %285 = sst [smem:[#allocation18 + $0x3]] %s3901_s22  ;;  %s3903_s26 = smov 2  }
  0x94   :  { %s2951_s19 = sshll.u32 %s267_s21, 26  ;;  %287 = sst [smem:[#allocation18 + $0x4]] %s3902_s0 }
  0x95   :  { %s2952_s12 = sadd.s32 134217728, %s2951_s19  ;;  %289 = sst [smem:[#allocation18 + $0x5]] %s3903_s26 }
  0x96   :  { %s3904_s1 = smov 256   ;;  %293 = sst [smem:[#allocation18 + $0x7]] %s3901_s22 }
  0x97   :  { %291 = sst [smem:[#allocation18 + $0x6]] %s3904_s1  ;;  %s3905_s28 = smov [#allocation5 + $0x1]  }
  0x98   :  { %295 = sst [smem:[#allocation18 + $0x8]] %s3900_s23  ;;  %s3906_s13 = smov [#allocation17]  }
  0x99   :  { %297 = dma.general %s3982_s24, 8192, %s276_s15, %s3905_s28, %s3906_s13, [#allocation18], %s2952_s12, 0  }
  0x9a   :  { %v4128_v9 = vld [vmem:[%s3987_s30] sm:$0xff]  ;;  %v4131_v10 = vld [vmem:[%s3987_s30 + $0x8] sm:$0xff]  ;;  %v4134_v11 = vld [vmem:[%s3987_s30 + $0x10] sm:$0xff] }
  0x9b   :  { %v4137_v12 = vld [vmem:[%s3987_s30 + $0x18] sm:$0xff]  ;;  %v4140_v13 = vld [vmem:[%s3987_s30 + $0x20] sm:$0xff]  ;;  %v4143_v14 = vld [vmem:[%s3987_s30 + $0x28] sm:$0xff] }
  0x9c   :  { %v4146_v15 = vld [vmem:[%s3987_s30 + $0x30] sm:$0xff]  ;;  %v4149_v16 = vld [vmem:[%s3987_s30 + $0x38] sm:$0xff]  ;;  %v4152_v17 = vld [vmem:[%s3987_s30 + $0x40] sm:$0xff] }
  0x9d   :  { %v4155_v18 = vld [vmem:[%s3987_s30 + $0x48] sm:$0xff]  ;;  %v4158_v19 = vld [vmem:[%s3987_s30 + $0x50] sm:$0xff]  ;;  %v4161_v20 = vld [vmem:[%s3987_s30 + $0x58] sm:$0xff] }
  0x9e   :  { %v4164_v21 = vld [vmem:[%s3987_s30 + $0x60] sm:$0xff]  ;;  %v4167_v22 = vld [vmem:[%s3987_s30 + $0x68] sm:$0xff]  ;;  %v4170_v23 = vld [vmem:[%s3987_s30 + $0x70] sm:$0xff] }
  0x9f   :  { %v4173_v24 = vld [vmem:[%s3987_s30 + $0x78] sm:$0xff]  ;;  %v4176_v25 = vld [vmem:[%s3987_s30 + $0x80] sm:$0xff]  ;;  %v4179_v26 = vld [vmem:[%s3987_s30 + $0x88] sm:$0xff] }
  0xa0   :  { %v4182_v27 = vld [vmem:[%s3987_s30 + $0x90] sm:$0xff]  ;;  %v4185_v28 = vld [vmem:[%s3987_s30 + $0x98] sm:$0xff]  ;;  %v4188_v29 = vld [vmem:[%s3987_s30 + $0xa0] sm:$0xff] }
  0xa1   :  { %v4191_v30 = vld [vmem:[%s3987_s30 + $0xa8] sm:$0xff]  ;;  %v4194_v31 = vld [vmem:[%s3987_s30 + $0xb0] sm:$0xff]  ;;  %v4197_v32 = vld [vmem:[%s3987_s30 + $0xb8] sm:$0xff] }
  0xa2   :  { %v4200_v33 = vld [vmem:[%s3987_s30 + $0xc0] sm:$0xff]  ;;  %v4203_v34 = vld [vmem:[%s3987_s30 + $0xc8] sm:$0xff]  ;;  %v4206_v35 = vld [vmem:[%s3987_s30 + $0xd0] sm:$0xff] }
  0xa3   :  { %v4209_v36 = vld [vmem:[%s3987_s30 + $0xd8] sm:$0xff]  ;;  %v4212_v37 = vld [vmem:[%s3987_s30 + $0xe0] sm:$0xff]  ;;  %v4215_v38 = vld [vmem:[%s3987_s30 + $0xe8] sm:$0xff] }
  0xa4   :  { %v4218_v39 = vld [vmem:[%s3987_s30 + $0xf0] sm:$0xff]  ;;  %v4221_v40 = vld [vmem:[%s3987_s30 + $0xf8] sm:$0xff] }
  0xa5   :  { %402 = vsyncadd [#allocation5 + $0x2], 4096  ;;  %v3530_v41 = vld [vmem:[%s3932_s9 + $0x4] ss:$16 sps:$4 sm:$0xff]   ;;  %v3532_v42 = vld [vmem:[%s3932_s9] ss:$16 sps:$4 sm:$0xff]  }
  0xa6   :  { %v3907_v43 = vmov 0   ;;  %v3533_v44 = vld [vmem:[%s3932_s9 + $0x24] ss:$16 sps:$4 sm:$0xff]   ;;  %527 = vmatprep.subr.bf16.mxu0 %v3530_v41  ;;  %v3535_v45 = vld [vmem:[%s3932_s9 + $0x20] ss:$16 sps:$4 sm:$0xff]   ;;  %vm523_vm0 = vcmask 523264  }
  0xa7   :  { %559 = vmatprep.mubr.bf16.mxu0 %v3907_v43  ;;  %600 = vmatprep.mubr.bf16.mxu1 %v3907_v43  ;;  %v3536_v46 = vld [vmem:[%s3932_s9 + $0x44] ss:$16 sps:$4 sm:$0xff]   ;;  %v3542_v47 = vld [vmem:[%s3932_s9 + $0xc] ss:$16 sps:$4 sm:$0xff]   ;;  %v3544_v48 = vld [vmem:[%s3932_s9 + $0x8] ss:$16 sps:$4 sm:$0xff]  }
  0xa8   :  { %528 = vmatpush1.bf16.msra.mxu0 %v3532_v42  ;;  %v3538_v49 = vld [vmem:[%s3932_s9 + $0x40] ss:$16 sps:$4 sm:$0xff]   ;;  %568 = vmatprep.subr.bf16.mxu1 %v3542_v47  ;;  %v3545_v50 = vld [vmem:[%s3932_s9 + $0x2c] ss:$16 sps:$4 sm:$0xff]   ;;  %v3539_v51 = vld [vmem:[%s3932_s9 + $0x64] ss:$16 sps:$4 sm:$0xff]  }
  0xa9   :  { %529 = vmatprep.subr.bf16.mxu0 %v3533_v44  ;;  %569 = vmatpush1.bf16.msra.mxu1 %v3544_v48  ;;  %v3547_v52 = vld [vmem:[%s3932_s9 + $0x28] ss:$16 sps:$4 sm:$0xff]   ;;  %v3548_v53 = vld [vmem:[%s3932_s9 + $0x4c] ss:$16 sps:$4 sm:$0xff]   ;;  %v3541_v54 = vld [vmem:[%s3932_s9 + $0x60] ss:$16 sps:$4 sm:$0xff]  }
  0xaa   :  { %570 = vmatprep.subr.bf16.mxu1 %v3545_v50  ;;  %v403_v55 = vld [vmem:[#allocation7] sm:$0x3]  ;;  %v3550_v56 = vld [vmem:[%s3932_s9 + $0x48] ss:$16 sps:$4 sm:$0xff]   ;;  %v3556_v57 = vld [vmem:[%s3942_s17 + $0x4] ss:$8 sps:$4 sm:$0xff]  }
  0xab   :  { %v3551_v58 = vld [vmem:[%s3932_s9 + $0x6c] ss:$16 sps:$4 sm:$0xff]   ;;  %v420_v59 = vpack.c.bf16 %v403_v55, %v403_v55  ;;  %v3554_v60 = vld [vmem:[%s3942_s17] ss:$8 sps:$4 sm:$0xff]   ;;  %v3557_v63 = vld [vmem:[%s3942_s17 + $0x10] ss:$8 sps:$4 sm:$0xff]  }
  0xac   :  { %530 = vmatpush1.bf16.msra.mxu0 %v3535_v45  ;;  %v3553_v61 = vld [vmem:[%s3932_s9 + $0x68] ss:$16 sps:$4 sm:$0xff]   ;;  %v3559_v62 = vld [vmem:[%s3942_s17 + $0x14] ss:$8 sps:$4 sm:$0xff]   ;;  %v3562_v0 = vld [vmem:[%s3942_s17 + $0x24] ss:$8 sps:$4 sm:$0xff]  }
  0xad   :  { %531 = vmatprep.subr.bf16.mxu0 %v3536_v46  ;;  %571 = vmatpush1.bf16.msra.mxu1 %v3547_v52  ;;  %v3560_v1 = vld [vmem:[%s3942_s17 + $0x20] ss:$8 sps:$4 sm:$0xff]   ;;  %v3565_v2 = vld [vmem:[%s3942_s17 + $0x34] ss:$8 sps:$4 sm:$0xff]   ;;  %v3563_v3 = vld [vmem:[%s3942_s17 + $0x30] ss:$8 sps:$4 sm:$0xff]  }
  0xae   :  { %572 = vmatprep.subr.bf16.mxu1 %v3548_v53  ;;  %v3568_v4 = vld [vmem:[%s3942_s17 + $0x44] ss:$8 sps:$4 sm:$0xff]   ;;  %v3566_v5 = vld [vmem:[%s3942_s17 + $0x40] ss:$8 sps:$4 sm:$0xff]   ;;  %v3571_v6 = vld [vmem:[%s3942_s17 + $0x54] ss:$8 sps:$4 sm:$0xff]  }
  0xaf   :  { %v3569_v7 = vld [vmem:[%s3942_s17 + $0x50] ss:$8 sps:$4 sm:$0xff]   ;;  %v3574_v8 = vld [vmem:[%s3942_s17 + $0x64] ss:$8 sps:$4 sm:$0xff]   ;;  %v3572_v41 = vld [vmem:[%s3942_s17 + $0x60] ss:$8 sps:$4 sm:$0xff]  }
  0xb0   :  { %532 = vmatpush1.bf16.msra.mxu0 %v3538_v49  ;;  %v3577_v42 = vld [vmem:[%s3942_s17 + $0x74] ss:$8 sps:$4 sm:$0xff]   ;;  %v3575_v44 = vld [vmem:[%s3942_s17 + $0x70] ss:$8 sps:$4 sm:$0xff]   ;;  %v3580_v45 = vld [vmem:[%s3942_s17 + $0x84] ss:$8 sps:$4 sm:$0xff]  }
  0xb1   :  { %533 = vmatprep.subr.bf16.mxu0 %v3539_v51  ;;  %573 = vmatpush1.bf16.msra.mxu1 %v3550_v56  ;;  %v3578_v46 = vld [vmem:[%s3942_s17 + $0x80] ss:$8 sps:$4 sm:$0xff]   ;;  %v3583_v47 = vld [vmem:[%s3942_s17 + $0x94] ss:$8 sps:$4 sm:$0xff]   ;;  %v3581_v48 = vld [vmem:[%s3942_s17 + $0x90] ss:$8 sps:$4 sm:$0xff]  }
  0xb2   :  { %574 = vmatprep.subr.bf16.mxu1 %v3551_v58  ;;  %v3586_v49 = vld [vmem:[%s3942_s17 + $0xa4] ss:$8 sps:$4 sm:$0xff]   ;;  %v3584_v50 = vld [vmem:[%s3942_s17 + $0xa0] ss:$8 sps:$4 sm:$0xff]   ;;  %v3589_v51 = vld [vmem:[%s3942_s17 + $0xb4] ss:$8 sps:$4 sm:$0xff]  }
  0xb3   :  { %v3587_v52 = vld [vmem:[%s3942_s17 + $0xb0] ss:$8 sps:$4 sm:$0xff]   ;;  %v3592_v53 = vld [vmem:[%s3942_s17 + $0xc4] ss:$8 sps:$4 sm:$0xff]   ;;  %v3595_v55 = vld [vmem:[%s3942_s17 + $0xd4] ss:$8 sps:$4 sm:$0xff]  }
  0xb4   :  { %534 = vmatpush1.bf16.msra.mxu0 %v3541_v54  ;;  %v3590_v54 = vld [vmem:[%s3942_s17 + $0xc0] ss:$8 sps:$4 sm:$0xff]   ;;  %v3593_v56 = vld [vmem:[%s3942_s17 + $0xd0] ss:$8 sps:$4 sm:$0xff]   ;;  %vm3909_vm1 = vmmov 0   ;;  %vm1280_vm2 = vcmask 261120  }
  0xb5   :  { %1013 = vmatprep.subr.bf16.mxu0 %v3556_v57  ;;  %575 = vmatpush1.bf16.msra.mxu1 %v3553_v61  ;;  %v3598_v57 = vld [vmem:[%s3942_s17 + $0xe4] ss:$8 sps:$4 sm:$0xff]   ;;  %v3596_v58 = vld [vmem:[%s3942_s17 + $0xe0] ss:$8 sps:$4 sm:$0xff]   ;;  %vm1365_vm3 = vcmask 123904   ;;  %vm1483_vm6 = vcmask 1024  }
  0xb6   :  { %v3604_v61 = vld [vmem:[%s3942_s17 + $0x104] ss:$8 sps:$4 sm:$0xff]   ;;  %vm1389_vm7 = vcmask 130048   ;;  %vm1465_vm9 = vcmask 254976   ;;  %vm1481_vm10 = vcmask 0  }
  0xb7   :  { %2969 = vmatmul.mubr.msk.bf16.vlgmr.msra.gmra.mrb[0].mxu0 %vm523_vm0, %v420_v59 }
  0xb8   :  { %1014 = vmatpush1.bf16.msra.mxu0 %v3554_v60  ;;  %2970 = vmatmul.mubr.msk.bf16.vlgmr.msra.gmra.mrb[0].mxu1 %vm523_vm0, %v420_v59  ;;  %v3601_v59 = vld [vmem:[%s3942_s17 + $0xf4] ss:$8 sps:$4 sm:$0xff]   ;;  %v3599_v60 = vld [vmem:[%s3942_s17 + $0xf0] ss:$8 sps:$4 sm:$0xff]  }
  0xb9   :  { %1015 = vmatprep.subr.bf16.mxu0 %v3559_v62  ;;  %v3650_v62 = vld [vmem:[%s3952_s25 + $0x40] sm:$0xff]  }
  0xba   :  { %3106 = vmatprep.subr.bf16.mxu1 %v3650_v62  ;;  %v3602_v62 = vld [vmem:[%s3942_s17 + $0x100] ss:$8 sps:$4 sm:$0xff]  }
  0xbc   :  { %1016 = vmatpush1.bf16.msra.mxu0 %v3557_v63  ;;  %v3651_v63 = vld [vmem:[%s3952_s25] sm:$0xff]  }
  0xbd   :  { %1017 = vmatprep.subr.bf16.mxu0 %v3562_v0  ;;  %v3652_v0 = vld [vmem:[%s3952_s25 + $0x48] sm:$0xff]   ;;  %3107 = vmatpush3.bf16.msra.mxu1 %v3651_v63 }
  0xbe   :  { %3108 = vmatprep.subr.bf16.mxu1 %v3652_v0 }
  0xc0   :  { %1018 = vmatpush1.bf16.msra.mxu0 %v3560_v1  ;;  %v3653_v1 = vld [vmem:[%s3952_s25 + $0x8] sm:$0xff]  }
  0xc1   :  { %1019 = vmatprep.subr.bf16.mxu0 %v3565_v2  ;;  %v3654_v2 = vld [vmem:[%s3952_s25 + $0x50] sm:$0xff]   ;;  %3109 = vmatpush3.bf16.msra.mxu1 %v3653_v1 }
  0xc2   :  { %3110 = vmatprep.subr.bf16.mxu1 %v3654_v2  ;;  %v3607_v1 = vld [vmem:[%s3942_s17 + $0x114] ss:$8 sps:$4 sm:$0xff]  }
  0xc4   :  { %1020 = vmatpush1.bf16.msra.mxu0 %v3563_v3  ;;  %v3655_v3 = vld [vmem:[%s3952_s25 + $0x10] sm:$0xff]  }
  0xc5   :  { %1021 = vmatprep.subr.bf16.mxu0 %v3568_v4  ;;  %v3656_v4 = vld [vmem:[%s3952_s25 + $0x58] sm:$0xff]   ;;  %3111 = vmatpush3.bf16.msra.mxu1 %v3655_v3 }
  0xc6   :  { %3112 = vmatprep.subr.bf16.mxu1 %v3656_v4 }
  0xc8   :  { %1022 = vmatpush1.bf16.msra.mxu0 %v3566_v5  ;;  %v3657_v5 = vld [vmem:[%s3952_s25 + $0x18] sm:$0xff]  }
  0xc9   :  { %1023 = vmatprep.subr.bf16.mxu0 %v3571_v6  ;;  %v3658_v6 = vld [vmem:[%s3952_s25 + $0x60] sm:$0xff]   ;;  %3113 = vmatpush3.bf16.msra.mxu1 %v3657_v5 }
  0xca   :  { %3114 = vmatprep.subr.bf16.mxu1 %v3658_v6  ;;  %v3605_v6 = vld [vmem:[%s3942_s17 + $0x110] ss:$8 sps:$4 sm:$0xff]  }
  0xcc   :  { %1024 = vmatpush1.bf16.msra.mxu0 %v3569_v7  ;;  %v3659_v7 = vld [vmem:[%s3952_s25 + $0x20] sm:$0xff]  }
  0xcd   :  { %1025 = vmatprep.subr.bf16.mxu0 %v3574_v8  ;;  %v3660_v8 = vld [vmem:[%s3952_s25 + $0x68] sm:$0xff]   ;;  %3115 = vmatpush3.bf16.msra.mxu1 %v3659_v7 }
  0xce   :  { %3116 = vmatprep.subr.bf16.mxu1 %v3660_v8  ;;  %v3610_v7 = vld [vmem:[%s3942_s17 + $0x124] ss:$8 sps:$4 sm:$0xff]  }
  0xd0   :  { %1026 = vmatpush1.bf16.msra.mxu0 %v3572_v41  ;;  %v3661_v41 = vld [vmem:[%s3952_s25 + $0x28] sm:$0xff]  }
  0xd1   :  { %1027 = vmatprep.subr.bf16.mxu0 %v3577_v42  ;;  %3117 = vmatpush3.bf16.msra.mxu1 %v3661_v41  ;;  %v423_v42 = vlaneseq  ;;  %v3608_v41 = vld [vmem:[%s3942_s17 + $0x120] ss:$8 sps:$4 sm:$0xff]  }
  0xd4   :  { %1028 = vmatpush1.bf16.msra.mxu0 %v3575_v44  ;;  %v4289_v44 = vshrl.u32 %v423_v42, 7 }
  0xd5   :  { %1029 = vmatprep.subr.bf16.mxu0 %v3580_v45 }
  0xd6   :  { %v4292_v45 = vsub.s32 0, %v4289_v44 }
  0xd8   :  { %1030 = vmatpush1.bf16.msra.mxu0 %v3578_v46  ;;  %v4294_v46 = vld [vmem:[#allocation10] sm:$0xf] }
  0xd9   :  { %1031 = vmatprep.subr.bf16.mxu0 %v3583_v47  ;;  %v4297_v47 = vsub.s32 1, %v4289_v44 }
  0xdc   :  { %1032 = vmatpush1.bf16.msra.mxu0 %v3581_v48  ;;  %v426_v48 = vrot.slane %v4294_v46, %v4292_v45 }
  0xdd   :  { %1033 = vmatprep.subr.bf16.mxu0 %v3586_v49  ;;  %v430_v49 = vrot.slane %v4294_v46, %v4297_v47 }
  0xe0   :  { %1034 = vmatpush1.bf16.msra.mxu0 %v3584_v50  ;;  %v437_v50 = vsub.s32 3, %v4289_v44 }
  0xe1   :  { %1035 = vmatprep.subr.bf16.mxu0 %v3589_v51 }
  0xe4   :  { %1036 = vmatpush1.bf16.msra.mxu0 %v3587_v52 }
  0xe5   :  { %1037 = vmatprep.subr.bf16.mxu0 %v3592_v53 }
  0xe8   :  { %1038 = vmatpush1.bf16.msra.mxu0 %v3590_v54 }
  0xe9   :  { %1039 = vmatprep.subr.bf16.mxu0 %v3595_v55 }
  0xec   :  { %1040 = vmatpush1.bf16.msra.mxu0 %v3593_v56 }
  0xed   :  { %1041 = vmatprep.subr.bf16.mxu0 %v3598_v57 }
  0xf0   :  { %1042 = vmatpush1.bf16.msra.mxu0 %v3596_v58  ;;  %v438_v58 = vrot.slane %v4294_v46, %v437_v50 }
  0xf1   :  { %1043 = vmatprep.subr.bf16.mxu0 %v3601_v59 }
  0xf4   :  { %1044 = vmatpush1.bf16.msra.mxu0 %v3599_v60 }
  0xf5   :  { %1054 = vmatprep.subr.bf16.mxu0 %v3604_v61 }
 0x18a   :  { %v561_v51 = vpop.f32.mrb[0].mxu0 }
 0x18b   :  { %v562_v52 = vadd.f32 %v561_v51, %v426_v48  ;;  %v563_v53 = vpop.f32.mrb[1].mxu0  ;;  %v4307_v60 = vpop.f32.mrb[0].mxu1  ;;  %v3613_v48 = vld [vmem:[%s3942_s17 + $0x134] ss:$8 sps:$4 sm:$0xff]   ;;  %v3616_v51 = vld [vmem:[%s3942_s17 + $0x144] ss:$8 sps:$4 sm:$0xff]  }
 0x18c   :  { %v564_v54 = vadd.f32 %v563_v53, %v430_v49  ;;  %v565_v55 = vpop.f32.mrb[2].mxu0  ;;  %v604_v63 = vpop.f32.mrb[1].mxu1  ;;  %v3611_v49 = vld [vmem:[%s3942_s17 + $0x130] ss:$8 sps:$4 sm:$0xff]   ;;  %v3619_v53 = vld [vmem:[%s3942_s17 + $0x154] ss:$8 sps:$4 sm:$0xff]  }
 0x18d   :  { %v609_v56 = vmax.f32 %v562_v52, 0.0  ;;  %v566_v57 = vpop.f32.mrb[3].mxu0  ;;  %v605_v2 = vadd.f32 %v604_v63, %v438_v58  ;;  %v606_v3 = vpop.f32.mrb[2].mxu1  ;;  %v3614_v52 = vld [vmem:[%s3942_s17 + $0x140] ss:$8 sps:$4 sm:$0xff]  }
 0x18e   :  { %v610_v59 = vmax.f32 %v564_v54, 0.0  ;;  %v607_v4 = vpop.f32.mrb[3].mxu1  ;;  %v3617_v54 = vld [vmem:[%s3942_s17 + $0x150] ss:$8 sps:$4 sm:$0xff]   ;;  %v3622_v55 = vld [vmem:[%s3942_s17 + $0x164] ss:$8 sps:$4 sm:$0xff]  }
 0x18f   :  { %v677_v0 = vpack.c.bf16 %v609_v56, %v609_v56  ;;  %v612_v5 = vmax.f32 %v605_v2, 0.0  ;;  %v3620_v56 = vld [vmem:[%s3942_s17 + $0x160] ss:$8 sps:$4 sm:$0xff]   ;;  %v3625_v57 = vld [vmem:[%s3942_s17 + $0x174] ss:$8 sps:$4 sm:$0xff]  }
 0x190   :  { %v678_v61 = vpack.c.bf16 %v610_v59, %v610_v59  ;;  %v3623_v58 = vld [vmem:[%s3942_s17 + $0x170] ss:$8 sps:$4 sm:$0xff]   ;;  %v3628_v59 = vld [vmem:[%s3942_s17 + $0x184] ss:$8 sps:$4 sm:$0xff]   ;;  %v3637_v2 = vld [vmem:[%s3942_s17 + $0x1b4] ss:$8 sps:$4 sm:$0xff]  }
 0x191   :  { %v680_v8 = vpack.c.bf16 %v612_v5, %v612_v5  ;;  %v3629_v63 = vld [vmem:[%s3942_s17 + $0x190] ss:$8 sps:$4 sm:$0xff]   ;;  %v3640_v4 = vld [vmem:[%s3942_s17 + $0x1c4] ss:$8 sps:$4 sm:$0xff]   ;;  %v3638_v5 = vld [vmem:[%s3942_s17 + $0x1c0] ss:$8 sps:$4 sm:$0xff]  }
 0x192   :  { %1045 = vmatprep.mubr.bf16.mxu0 %v678_v61  ;;  %v3626_v61 = vld [vmem:[%s3942_s17 + $0x180] ss:$8 sps:$4 sm:$0xff]   ;;  %v3635_v3 = vld [vmem:[%s3942_s17 + $0x1b0] ss:$8 sps:$4 sm:$0xff]  }
 0x193   :  { %1046 = vmatmul.mubr.bf16.vlgmr.msra.gmra.mrb[4].mxu0 %v677_v0  ;;  %v3634_v0 = vld [vmem:[%s3942_s17 + $0x1a4] ss:$8 sps:$4 sm:$0xff]  }
 0x194   :  { %1055 = vmatpush1.bf16.msra.mxu0 %v3602_v62  ;;  %1086 = vmatprep.mubr.bf16.mxu0 %v680_v8  ;;  %v3631_v62 = vld [vmem:[%s3942_s17 + $0x194] ss:$8 sps:$4 sm:$0xff]   ;;  %v3641_v8 = vld [vmem:[%s3942_s17 + $0x1d0] ss:$8 sps:$4 sm:$0xff]  }
 0x195   :  { %1056 = vmatprep.subr.bf16.mxu0 %v3607_v1  ;;  %v3632_v1 = vld [vmem:[%s3942_s17 + $0x1a0] ss:$8 sps:$4 sm:$0xff]  }
 0x198   :  { %1057 = vmatpush1.bf16.msra.mxu0 %v3605_v6  ;;  %v433_v6 = vsub.s32 2, %v4289_v44 }
 0x199   :  { %1058 = vmatprep.subr.bf16.mxu0 %v3610_v7  ;;  %v3643_v7 = vld [vmem:[%s3942_s17 + $0x1d4] ss:$8 sps:$4 sm:$0xff]  }
 0x19c   :  { %1059 = vmatpush1.bf16.msra.mxu0 %v3608_v41  ;;  %v434_v41 = vrot.slane %v4294_v46, %v433_v6  ;;  %v3663_v46 = vld [vmem:[%s3952_s25 + $0x30] sm:$0xff]  }
 0x19d   :  { %1060 = vmatprep.subr.bf16.mxu0 %v3613_v48  ;;  %v3646_v48 = vld [vmem:[%s3942_s17 + $0x1e4] ss:$8 sps:$4 sm:$0xff]  }
 0x1a0   :  { %1061 = vmatpush1.bf16.msra.mxu0 %v3611_v49  ;;  %v3644_v49 = vld [vmem:[%s3942_s17 + $0x1e0] ss:$8 sps:$4 sm:$0xff]  }
 0x1a1   :  { %1062 = vmatprep.subr.bf16.mxu0 %v3616_v51  ;;  %v603_v51 = vadd.f32 %v4307_v60, %v434_v41  ;;  %v3908_v60 = vmov 0.0|0.0  }
 0x1a4   :  { %1063 = vmatpush1.bf16.msra.mxu0 %v3614_v52  ;;  %v3649_v52 = vld [vmem:[%s3942_s17 + $0x1f4] ss:$8 sps:$4 sm:$0xff]  }
 0x1a5   :  { %1064 = vmatprep.subr.bf16.mxu0 %v3619_v53  ;;  %v3647_v53 = vld [vmem:[%s3942_s17 + $0x1f0] ss:$8 sps:$4 sm:$0xff]  }
 0x1a8   :  { %1065 = vmatpush1.bf16.msra.mxu0 %v3617_v54  ;;  %v611_v54 = vmax.f32 %v603_v51, 0.0 }
 0x1a9   :  { %1066 = vmatprep.subr.bf16.mxu0 %v3622_v55 }
 0x1aa   :  { %v679_v55 = vpack.c.bf16 %v611_v54, %v611_v54 }
 0x1ac   :  { %1067 = vmatpush1.bf16.msra.mxu0 %v3620_v56  ;;  %v3662_v56 = vld [vmem:[%s3952_s25 + $0x70] sm:$0xff]  }
 0x1ad   :  { %1068 = vmatprep.subr.bf16.mxu0 %v3625_v57  ;;  %3118 = vmatprep.subr.bf16.mxu1 %v3662_v56  ;;  %v3664_v57 = vld [vmem:[%s3952_s25 + $0x78] sm:$0xff]  }
 0x1ae   :  { %3119 = vmatpush3.bf16.msra.mxu1 %v3663_v46  ;;  %v3035_v46 = vld [vmem:[#allocation13] ss:$0 sm:$0xff] }
 0x1af   :  { %3120 = vmatprep.subr.bf16.mxu1 %v3664_v57 }
 0x1b0   :  { %1069 = vmatpush1.bf16.msra.mxu0 %v3623_v58  ;;  %v3665_v58 = vld [vmem:[%s3952_s25 + $0x38] sm:$0xff]  }
 0x1b1   :  { %1070 = vmatprep.subr.bf16.mxu0 %v3628_v59  ;;  %v681_v59 = vld [vmem:[#allocation12] sm:$0x3] }
 0x1b2   :  { %3121 = vmatpush3.bf16.msra.mxu1 %v3665_v58 }
 0x1b3   :  { %3367 = vmatprep.subr.bf16.mxu1 %v3908_v60 }
 0x1b4   :  { %1071 = vmatpush1.bf16.msra.mxu0 %v3626_v61  ;;  %v686_v61 = vrot.slane %v681_v59, %v4292_v45 }
 0x1b5   :  { %1072 = vmatprep.subr.bf16.mxu0 %v3631_v62  ;;  %v690_v62 = vrot.slane %v681_v59, %v4297_v47 }
 0x1b8   :  { %1073 = vmatpush1.bf16.msra.mxu0 %v3629_v63 }
 0x1b9   :  { %1074 = vmatprep.subr.bf16.mxu0 %v3634_v0 }
 0x1bc   :  { %1075 = vmatpush1.bf16.msra.mxu0 %v3632_v1 }
 0x1bd   :  { %1076 = vmatprep.subr.bf16.mxu0 %v3637_v2 }
 0x1c0   :  { %1077 = vmatpush1.bf16.msra.mxu0 %v3635_v3 }
 0x1c1   :  { %1078 = vmatprep.subr.bf16.mxu0 %v3640_v4 }
 0x1c4   :  { %1079 = vmatpush1.bf16.msra.mxu0 %v3638_v5 }
 0x1c5   :  { %1080 = vmatprep.subr.bf16.mxu0 %v3643_v7  ;;  %v1276_v7 = vld [vmem:[%s3967_s8] sm:$0xff] }
 0x1c8   :  { %1081 = vmatpush1.bf16.msra.mxu0 %v3641_v8  ;;  %v1277_v8 = vld [vmem:[%s3967_s8 + $0x8] sm:$0xff] }
 0x1c9   :  { %1082 = vmatprep.subr.bf16.mxu0 %v3646_v48 }
 0x1cc   :  { %1083 = vmatpush1.bf16.msra.mxu0 %v3644_v49  ;;  %v3368_v49 = vpack.c.bf16 %v1277_v8, %v1276_v7 }
 0x1cd   :  { %1084 = vmatprep.subr.bf16.mxu0 %v3649_v52  ;;  %v1278_v52 = vld [vmem:[%s3967_s8 + $0x10] sm:$0xff] }
 0x1d0   :  { %1085 = vmatpush1.bf16.msra.mxu0 %v3647_v53  ;;  %v1279_v53 = vld [vmem:[%s3967_s8 + $0x18] sm:$0xff] }
 0x1d1   :  { %v3371_v54 = vpack.c.bf16 %v1279_v53, %v1278_v52 }
 0x1d3   :  { %1087 = vmatmul.mubr.bf16.vlgmr.msra.gmra.mrb[4].mxu0 %v679_v55  ;;  %v3910_v55 = vmov 0.0  }
 0x2a6   :  { %v1088_v63 = vpop.f32.mrb[4].mxu0 }
 0x2a7   :  { %v3463_v0 = vadd.f32 %v1088_v63, %v686_v61  ;;  %v1090_v1 = vpop.f32.mrb[5].mxu0 }
 0x2a8   :  { %v3464_v2 = vadd.f32 %v1090_v1, %v690_v62  ;;  %v1092_v3 = vpop.f32.mrb[6].mxu0 }
 0x2a9   :  { %v1095_v4 = vmax.f32 %v3463_v0, 0.0  ;;  %v1093_v5 = vpop.f32.mrb[7].mxu0  ;;  %v3053_v0 = vld [vmem:[%s3972_s14] ss:$0 sm:$0xff] }
 0x2aa   :  { %v1096_v41 = vmax.f32 %v3464_v2, 0.0  ;;  %v4368_v5 = vand.u32 127, %v423_v42 }
 0x2ab   :  { %v1129_v51 = vpack.c.bf16 %v1095_v4, %v1095_v4 }
 0x2ac   :  { %v1130_v48 = vpack.c.bf16 %v1096_v41, %v1096_v41 }
 0x2ae   :  { %1266 = vmatprep.mubr.bf16.mxu1 %v1130_v48 }
 0x2af   :  { %1267 = vmatmul.mubr.bf16.vlgmr.msra.gmra.mrb[4].mxu1 %v1129_v51 }
 0x2b0   :  { %3369 = vmatpush3.bf16.msra.mxu1 %v3368_v49  ;;  %3246 = vmatprep.mubr.msk.f32.mxu1 %vm3909_vm1, %v3910_v55 }
 0x2b1   :  { %3370 = vmatprep.subr.bf16.mxu1 %v3908_v60 }
 0x2b4   :  { %3372 = vmatpush3.bf16.msra.mxu1 %v3371_v54 }
 0x2b5   :  { %3373 = vmatprep.subr.bf16.mxu1 %v3908_v60 }
 0x382   :  { %v3122_v56 = vpop.f32.mrb[4].mxu1 }
 0x383   :  { %v3123_v57 = vpop.f32.mrb[5].mxu1 }
 0x384   :  { %v3124_v58 = vadd.f32 %v3123_v57, %v3122_v56  ;;  %v3125_v59 = vpop.f32.mrb[6].mxu1  ;;  %v1274_v56 = vld [vmem:[%s3962_s3] sm:$0xff] }
 0x385   :  { %v3126_v61 = vpop.f32.mrb[7].mxu1 }
 0x386   :  { %v4360_v62 = vadd.f32 %v3124_v58, %v3035_v46  ;;  %v1275_v46 = vld [vmem:[%s3962_s3 + $0x8] sm:$0xff] }
 0x387   :  { %v3374_v57 = vpack.c.bf16 %v1275_v46, %v1274_v56 }
 0x388   :  { %3247 = vmatmul.mubr.msk.f32.vlgmr.msra.gmra.mrb[8].mxu1 %vm1280_vm2, %v4360_v62 }
 0x389   :  { %3253 = vmatprep.mubr.msk.f32.mxu1 %vm3909_vm1, %v3910_v55  ;;  %3375 = vmatpush3.bf16.msra.mxu1 %v3374_v57 }
 0x45b   :  { %v1350_v63 = vpop.f32.mrb[8].mxu1 }
 0x45c   :  { %v1355_v1 = vmul.f32 2.0, %v1350_v63  ;;  %v3248_v2 = vpop.f32.mrb[9].mxu1 }
 0x45e   :  { %v1362_v3 = vsub.f32 %v3053_v0, %v1355_v1 }
 0x460   :  { %v1366_v4 = vsel %vm1365_vm3, %v1362_v3, inf }
 0x461   :  { %1367 = vmin.xlane.f32.xlu0 %v1366_v4 }
 0x4ee   :  { %v1368_v7 = vpop.xlane.xlu0 %1367 }
 0x4ef   :  { %vm1369_vm4 = vcmp.eq.f32.partialorder %v1362_v3, %v1368_v7 }
 0x4f0   :  { %v1370_v8 = vsel %vm1369_vm4, %v4368_v5, 16 }
 0x4f1   :  { %v1371_v41 = vsel %vm1365_vm3, %v1370_v8, 2147483647 }
 0x4f2   :  { %v1373_v48 = vshra.s32 %v1371_v41, 16  ;;  %v1372_v51 = vand.u32 65535, %v1371_v41 }
 0x4f4   :  { %v1375_v49 = vcvt.s32.f32 %v1373_v48  ;;  %v1374_v53 = vcvt.s32.f32 %v1372_v51 }
 0x4f6   :  { %1376 = vmin.xlane.f32.xlu0 %v1375_v49 }
 0x583   :  { %v1377_v52 = vpop.xlane.xlu0 %1376 }
 0x584   :  { %vm1378_vm5 = vcmp.eq.f32.partialorder %v1375_v49, %v1377_v52  ;;  %v1383_v42 = vcvt.f32.s32 %v1377_v52 }
 0x585   :  { %v1379_v54 = vsel %vm1378_vm5, %v1374_v53, inf }
 0x586   :  { %1380 = vmin.xlane.f32.xlu1 %v1379_v54  ;;  %v1384_v59 = vshll.u32 %v1383_v42, 16 }
 0x613   :  { %v1381_v58 = vpop.xlane.xlu1 %1380 }
 0x614   :  { %v1382_v61 = vcvt.f32.s32 %v1381_v58 }
 0x616   :  { %v1385_v63 = vadd.s32 %v1384_v59, %v1382_v61 }
 0x618   :  { %vm1386_vm8 = vcmp.eq.s32.totalorder %v4368_v5, %v1385_v63  ;;  %1484 = vst.msk [vmem:[%s4090_s4] sm:$0x3] %vm1483_vm6, %v1385_v63 }
 0x619   :  { %v3054_v0 = vsel %vm1386_vm8, 1.0, %v3910_v55 }
 0x61a   :  { %3254 = vmatmul.mubr.msk.f32.vlgmr.msra.gmra.mrb[10].mxu1 %vm1389_vm7, %v3054_v0 }
 0x6ed   :  { %v1459_v1 = vpop.f32.mrb[10].mxu1 }
 0x6ee   :  { %v1463_v2 = vsub.f32 %v1459_v1, %v4360_v62  ;;  %v3255_v3 = vpop.f32.mrb[11].mxu1 }
 0x6f0   :  { %v1464_v4 = vmul.f32 %v1463_v2, %v1463_v2 }
 0x6f2   :  { %v1466_v7 = vsel %vm1465_vm9, %v1464_v4, 0.0 }
 0x6f3   :  { %1467 = vadd.xlane.f32.xlu1 %v1466_v7 }
 0x780   :  { %v1468_v8 = vpop.xlane.xlu1 %1467 }
 0x781   :  { %v1469_v41 = vrot.slane %v1468_v8, 4 }
 0x783   :  { %v1470_v48 = vadd.f32 %v1469_v41, %v1468_v8 }
 0x785   :  { %v1471_v49 = vrot.slane %v1470_v48, 2 }
 0x787   :  { %v1472_v51 = vadd.f32 %v1471_v49, %v1470_v48 }
 0x789   :  { %v1473_v52 = vrot.slane %v1472_v51, 1 }
 0x78b   :  { %v1474_v53 = vadd.f32 %v1473_v52, %v1472_v51 }
 0x78d   :  { %3469 = vpush %v1474_v53 }
 0x7be   :  { %s3470_s9 = spop %3469 }
 0x7bf   :  { %s1478_s17 = smul.f32 0.015625, %s3470_s9 }
 0x7c1   :  { %s1479_s25 = smul.f32 0.25, %s1478_s17 }
 0x7c3   :  { %v1480_v54 = vstv %s1479_s25 }
 0x7c4   :  { %1482 = vst.msk [vmem:[#allocation15] sm:$0x1] %vm1481_vm10, %v1480_v54 }
 0x7c5   :  { %3852 = dma.done.wait [#allocation5], 512 }
 0x7c6   :  { %3853 = vsyncadd [#allocation5], 4294966784 }
 0x7c7   :  { %3854 = dma.done.wait [#allocation5 + $0x1], 8192 }
 0x7c8   :  { %3855 = vsyncadd [#allocation5 + $0x1], 4294959104 }
 0x7c9   :  { %3856 = dma.done.wait [#allocation5 + $0x2], 4096 }
 0x7ca   :  { %3857 = vsyncadd [#allocation5 + $0x2], 4294963200  ;;  %1549 = vmatprep.mubr.bf16.mxu1 %v3907_v43  ;;  %3136 = vmatprep.subr.bf16.mxu0 %v4152_v17  ;;  %v1498_v56 = vld [vmem:[#allocation2 + $0x8] sm:$0xff]  ;;  %v1497_v46 = vld [vmem:[#allocation2] sm:$0xff]  ;;  %v1501_v17 = vpack.c.bf16 %v1459_v1, %v1459_v1  ;;  %s4636_s3 = sld [smem:[#allocation27_spill]]  ;;  %s4637_s8 = sld [smem:[#allocation28_spill]] }
 0x7cb   :  { %3137 = vmatpush3.bf16.msra.mxu0 %v4128_v9  ;;  %3666 = vset.pattern.permute.xlu1 %v3907_v43  ;;  %v1500_v57 = vld [vmem:[#allocation2 + $0x18] sm:$0xff]  ;;  %v1499_v42 = vld [vmem:[#allocation2 + $0x10] sm:$0xff]  ;;  %v1561_v9 = vld [vmem:[#allocation3 + $0x8] sm:$0xff]  ;;  %s4638_s14 = sld [smem:[#allocation30_spill]]  ;;  %s4639_s24 = sld [smem:[#allocation29_spill]]  ;;  %v3912_v44 = vmov 2  }
 0x7cc   :  { %3138 = vmatprep.subr.bf16.mxu0 %v4155_v18  ;;  %1517 = vmatprep.subr.bf16.mxu1 %v1498_v56  ;;  %v1565_v18 = vld [vmem:[#allocation3 + $0x28] sm:$0xff]  ;;  %v1600_v1 = vld [vmem:[#allocation3 + $0x140] sm:$0xff]  ;;  %v1563_v53 = vld [vmem:[#allocation3 + $0x18] sm:$0xff]  ;;  %s4640_s30 = sld [smem:[#allocation31_spill]]  ;;  %s4641_s4 = sld [smem:[#allocation33_spill]]  ;;  %vm1991_vm13 = vcmask 392192  }
 0x7cd   :  { %1518 = vmatpush1.bf16.msra.mxu1 %v1497_v46  ;;  %v1585_v58 = vld [vmem:[#allocation3 + $0xc8] sm:$0xff]  ;;  %v1604_v3 = vld [vmem:[#allocation3 + $0x160] sm:$0xff]  ;;  %3668 = vset.pattern.permute.xlu0 %v3912_v44  ;;  %s3913_s2 = smov 127   ;;  %s3914_s10 = smov 1   ;;  %vm2130_vm10 = vcmask 785408  }
 0x7ce   :  { %1519 = vmatprep.subr.bf16.mxu1 %v1500_v57  ;;  %v1589_v59 = vld [vmem:[#allocation3 + $0xe8] sm:$0xff]  ;;  %v1608_v7 = vld [vmem:[#allocation3 + $0x180] sm:$0xff]  ;;  %s4642_s7 = sld [smem:[#allocation32_spill]]  ;;  %s3915_s5 = smov 126  }
 0x7cf   :  { %3139 = vmatpush3.bf16.msra.mxu0 %v4131_v10  ;;  %v1560_v10 = vld [vmem:[#allocation3] sm:$0xff]  ;;  %v1593_v61 = vld [vmem:[#allocation3 + $0x108] sm:$0xff]  ;;  %s4647_s11 = sld [smem:[#allocation35_spill]]  ;;  %s3916_s16 = smov 124  }
 0x7d0   :  { %3140 = vmatprep.subr.bf16.mxu0 %v4158_v19  ;;  %v1569_v19 = vld [vmem:[#allocation3 + $0x48] sm:$0xff]  ;;  %v1612_v41 = vld [vmem:[#allocation3 + $0x1a0] sm:$0xff]  ;;  %s4648_s21 = sld [smem:[#allocation34_spill]]  ;;  %s4649_s29 = sld [smem:[#allocation36_spill]] }
 0x7d1   :  { %1520 = vmatpush1.bf16.msra.mxu1 %v1499_v42  ;;  %v1597_v63 = vld [vmem:[#allocation3 + $0x128] sm:$0xff]  ;;  %v1616_v49 = vld [vmem:[#allocation3 + $0x1c0] sm:$0xff]  ;;  %s4650_s15 = sld [smem:[#allocation38_spill]]  ;;  %s4651_s18 = sld [smem:[#allocation37_spill]] }
 0x7d2   :  { %1648 = vmatprep.subr.bf16.mxu1 %v1561_v9  ;;  %v1601_v0 = vld [vmem:[#allocation3 + $0x148] sm:$0xff]  ;;  %v1620_v52 = vld [vmem:[#allocation3 + $0x1e0] sm:$0xff]  ;;  %s4656_s19 = sld [smem:[#allocation41_spill]]  ;;  %s4657_s0 = sld [smem:[#allocation42_spill]] }
 0x7d3   :  { %3141 = vmatpush3.bf16.msra.mxu0 %v4134_v11  ;;  %v1564_v11 = vld [vmem:[#allocation3 + $0x20] sm:$0xff]  ;;  %v1605_v2 = vld [vmem:[#allocation3 + $0x168] sm:$0xff]  ;;  %s3917_s12 = smov 32   ;;  %s3918_s1 = smov [#allocation15]  }
 0x7d4   :  { %3142 = vmatprep.subr.bf16.mxu0 %v4161_v20  ;;  %3056 = vmatmul.mubr.msk.bf16.vlgmr.msra.gmra.mrb[12].mxu1 %vm1280_vm2, %v1501_v17  ;;  %v1573_v20 = vld [vmem:[#allocation3 + $0x68] sm:$0xff]  ;;  %v1502_v54 = vld [vmem:[%s4636_s3] sm:$0x3]  ;;  %s2858_s28 = sshll.u32 %s3918_s1, 4  ;;  %s2859_s28 = int_to_ptr.vmem [resolvable:$true] %s2858_s28 }
 0x7d5   :  { %1649 = vmatpush1.bf16.msra.mxu1 %v1560_v10  ;;  %v1609_v4 = vld [vmem:[#allocation3 + $0x188] sm:$0xff]  ;;  %v1507_v56 = vrot.slane %v1502_v54, %v4292_v45  ;;  %v1511_v46 = vrot.slane %v1502_v54, %v4297_v47  ;;  %v1614_v54 = vld [vmem:[#allocation3 + $0x1b0] sm:$0xff]  ;;  %s3824_s13 = scalar_lea.vmem %s2859_s28, 16  ;;  %s3828_s9 = scalar_lea.vmem %s2859_s28, 32 }
 0x7d6   :  { %1650 = vmatprep.subr.bf16.mxu1 %v1565_v18  ;;  %v1613_v8 = vld [vmem:[#allocation3 + $0x1a8] sm:$0xff]  ;;  %p3825_p4 = scmp.ne.s32.totalorder %s2859_s28, %s3824_s13  ;;  %p3829_p5 = scmp.lt.s32.totalorder %s2859_s28, %s2859_s28 }
 0x7d7   :  { %3143 = vmatpush3.bf16.msra.mxu0 %v4137_v12  ;;  %v1568_v12 = vld [vmem:[#allocation3 + $0x40] sm:$0xff]  ;;  %v1617_v48 = vld [vmem:[#allocation3 + $0x1c8] sm:$0xff]  ;;  %p3830_p6 = scmp.lt.s32.totalorder %s3828_s9, %s3824_s13 }
 0x7d8   :  { %3144 = vmatprep.subr.bf16.mxu0 %v4164_v21  ;;  %v1572_v21 = vld [vmem:[#allocation3 + $0x60] sm:$0xff]  ;;  %v1621_v51 = vld [vmem:[#allocation3 + $0x1e8] sm:$0xff] }
 0x7d9   :  { %1651 = vmatpush1.bf16.msra.mxu1 %v1564_v11  ;;  %p3831_p7 = por %p3830_p6, %p3829_p5 }
 0x7da   :  { %1652 = vmatprep.subr.bf16.mxu1 %v1569_v19 }
 0x7db   :  { %3145 = vmatpush3.bf16.msra.mxu0 %v4140_v13  ;;  %v1577_v13 = vld [vmem:[#allocation3 + $0x88] sm:$0xff]  ;;  %p3832_p8 = pnand %p3831_p7, %p3825_p4 }
 0x7dc   :  { %3146 = vmatprep.subr.bf16.mxu0 %v4167_v22  ;;  %v1576_v22 = vld [vmem:[#allocation3 + $0x80] sm:$0xff] }
 0x7dd   :  { %1653 = vmatpush1.bf16.msra.mxu1 %v1568_v12 }
 0x7de   :  { %1654 = vmatprep.subr.bf16.mxu1 %v1573_v20 }
 0x7df   :  { %3147 = vmatpush3.bf16.msra.mxu0 %v4143_v14  ;;  %v1581_v14 = vld [vmem:[#allocation3 + $0xa8] sm:$0xff] }
 0x7e0   :  { %3148 = vmatprep.subr.bf16.mxu0 %v4170_v23  ;;  %v1580_v23 = vld [vmem:[#allocation3 + $0xa0] sm:$0xff] }
 0x7e1   :  { %1655 = vmatpush1.bf16.msra.mxu1 %v1572_v21  ;;  %v1562_v21 = vld [vmem:[#allocation3 + $0x10] sm:$0xff] }
 0x7e2   :  { %1656 = vmatprep.subr.bf16.mxu1 %v1577_v13  ;;  %v1567_v13 = vld [vmem:[#allocation3 + $0x38] sm:$0xff] }
 0x7e3   :  { %3149 = vmatpush3.bf16.msra.mxu0 %v4146_v15  ;;  %v1584_v15 = vld [vmem:[#allocation3 + $0xc0] sm:$0xff] }
 0x7e4   :  { %3150 = vmatprep.subr.bf16.mxu0 %v4173_v24  ;;  %v1588_v24 = vld [vmem:[#allocation3 + $0xe0] sm:$0xff] }
 0x7e5   :  { %1657 = vmatpush1.bf16.msra.mxu1 %v1576_v22  ;;  %v1566_v22 = vld [vmem:[#allocation3 + $0x30] sm:$0xff] }
 0x7e6   :  { %1658 = vmatprep.subr.bf16.mxu1 %v1581_v14  ;;  %v1571_v14 = vld [vmem:[#allocation3 + $0x58] sm:$0xff] }
 0x7e7   :  { %3151 = vmatpush3.bf16.msra.mxu0 %v4149_v16  ;;  %v1592_v16 = vld [vmem:[#allocation3 + $0x100] sm:$0xff] }
 0x7e8   :  { %3158 = vmatprep.subr.bf16.mxu0 %v4200_v33  ;;  %v1596_v33 = vld [vmem:[#allocation3 + $0x120] sm:$0xff] }
 0x7e9   :  { %1659 = vmatpush1.bf16.msra.mxu1 %v1580_v23  ;;  %v1570_v23 = vld [vmem:[#allocation3 + $0x50] sm:$0xff] }
 0x7ea   :  { %1660 = vmatprep.subr.bf16.mxu1 %v1585_v58  ;;  %v1575_v58 = vld [vmem:[#allocation3 + $0x78] sm:$0xff] }
 0x7ed   :  { %1661 = vmatpush1.bf16.msra.mxu1 %v1584_v15  ;;  %v1574_v15 = vld [vmem:[#allocation3 + $0x70] sm:$0xff] }
 0x7ee   :  { %1662 = vmatprep.subr.bf16.mxu1 %v1589_v59  ;;  %v1579_v59 = vld [vmem:[#allocation3 + $0x98] sm:$0xff] }
 0x7f1   :  { %1663 = vmatpush1.bf16.msra.mxu1 %v1588_v24  ;;  %v1578_v24 = vld [vmem:[#allocation3 + $0x90] sm:$0xff] }
 0x7f2   :  { %1664 = vmatprep.subr.bf16.mxu1 %v1593_v61  ;;  %v1583_v61 = vld [vmem:[#allocation3 + $0xb8] sm:$0xff] }
 0x7f5   :  { %1665 = vmatpush1.bf16.msra.mxu1 %v1592_v16  ;;  %v1582_v16 = vld [vmem:[#allocation3 + $0xb0] sm:$0xff] }
 0x7f6   :  { %1666 = vmatprep.subr.bf16.mxu1 %v1597_v63  ;;  %v1587_v63 = vld [vmem:[#allocation3 + $0xd8] sm:$0xff] }
 0x7f9   :  { %1667 = vmatpush1.bf16.msra.mxu1 %v1596_v33  ;;  %v1586_v33 = vld [vmem:[#allocation3 + $0xd0] sm:$0xff] }
 0x7fa   :  { %1668 = vmatprep.subr.bf16.mxu1 %v1601_v0  ;;  %v1591_v0 = vld [vmem:[#allocation3 + $0xf8] sm:$0xff] }
 0x7fd   :  { %1669 = vmatpush1.bf16.msra.mxu1 %v1600_v1  ;;  %v1590_v1 = vld [vmem:[#allocation3 + $0xf0] sm:$0xff] }
 0x7fe   :  { %1670 = vmatprep.subr.bf16.mxu1 %v1605_v2  ;;  %v1595_v2 = vld [vmem:[#allocation3 + $0x118] sm:$0xff] }
 0x801   :  { %1671 = vmatpush1.bf16.msra.mxu1 %v1604_v3  ;;  %v1594_v3 = vld [vmem:[#allocation3 + $0x110] sm:$0xff] }
 0x802   :  { %1672 = vmatprep.subr.bf16.mxu1 %v1609_v4  ;;  %v1599_v4 = vld [vmem:[#allocation3 + $0x138] sm:$0xff] }
 0x805   :  { %1673 = vmatpush1.bf16.msra.mxu1 %v1608_v7  ;;  %v1598_v7 = vld [vmem:[#allocation3 + $0x130] sm:$0xff] }
 0x806   :  { %1674 = vmatprep.subr.bf16.mxu1 %v1613_v8  ;;  %v1603_v8 = vld [vmem:[#allocation3 + $0x158] sm:$0xff] }
 0x809   :  { %1675 = vmatpush1.bf16.msra.mxu1 %v1612_v41  ;;  %v1602_v41 = vld [vmem:[#allocation3 + $0x150] sm:$0xff] }
 0x80a   :  { %1676 = vmatprep.subr.bf16.mxu1 %v1617_v48  ;;  %v1607_v48 = vld [vmem:[#allocation3 + $0x178] sm:$0xff] }
 0x80d   :  { %1677 = vmatpush1.bf16.msra.mxu1 %v1616_v49  ;;  %v1606_v49 = vld [vmem:[#allocation3 + $0x170] sm:$0xff] }
 0x80e   :  { %1678 = vmatprep.subr.bf16.mxu1 %v1621_v51  ;;  %v1611_v51 = vld [vmem:[#allocation3 + $0x198] sm:$0xff] }
 0x811   :  { %1679 = vmatpush1.bf16.msra.mxu1 %v1620_v52  ;;  %v1610_v52 = vld [vmem:[#allocation3 + $0x190] sm:$0xff] }
 0x812   :  { %1689 = vmatprep.subr.bf16.mxu1 %v1563_v53  ;;  %v1615_v53 = vld [vmem:[#allocation3 + $0x1b8] sm:$0xff] }
 0x8a7   :  { %v1551_v57 = vpop.f32.mrb[12].mxu1 }
 0x8a8   :  { %v1552_v42 = vadd.f32 %v1551_v57, %v1507_v56  ;;  %v1553_v9 = vpop.f32.mrb[13].mxu1  ;;  %v1619_v56 = vld [vmem:[#allocation3 + $0x1d8] sm:$0xff] }
 0x8a9   :  { %v1554_v17 = vadd.f32 %v1553_v9, %v1511_v46  ;;  %v1555_v10 = vpop.f32.mrb[14].mxu1  ;;  %v1618_v46 = vld [vmem:[#allocation3 + $0x1d0] sm:$0xff]  ;;  %v1623_v57 = vld [vmem:[#allocation3 + $0x1f8] sm:$0xff]  ;;  %v1626_v9 = vld [vmem:[%s4637_s8] sm:$0xf] }
 0x8aa   :  { %v1558_v18 = vmax.f32 %v1552_v42, 0.0  ;;  %v1556_v11 = vpop.f32.mrb[15].mxu1  ;;  %v1622_v42 = vld [vmem:[#allocation3 + $0x1f0] sm:$0xff]  ;;  %v1635_v10 = vrot.slane %v1626_v9, %v4297_v47 }
 0x8ab   :  { %v1559_v19 = vmax.f32 %v1554_v17, 0.0  ;;  %v1631_v17 = vrot.slane %v1626_v9, %v4292_v45 }
 0x8ac   :  { %v4401_v20 = vpack.c.bf16 %v1558_v18, %v1558_v18 }
 0x8ad   :  { %v1625_v12 = vpack.c.bf16 %v1559_v19, %v1559_v19 }
 0x8af   :  { %1680 = vmatprep.mubr.bf16.mxu1 %v1625_v12 }
 0x8b0   :  { %1681 = vmatmul.mubr.bf16.vlgmr.msra.gmra.mrb[16].mxu1 %v4401_v20 }
 0x8b1   :  { %1690 = vmatpush1.bf16.msra.mxu1 %v1562_v21  ;;  %1721 = vmatprep.mubr.bf16.mxu1 %v1625_v12 }
 0x8b2   :  { %1691 = vmatprep.subr.bf16.mxu1 %v1567_v13 }
 0x8b5   :  { %1692 = vmatpush1.bf16.msra.mxu1 %v1566_v22 }
 0x8b6   :  { %1693 = vmatprep.subr.bf16.mxu1 %v1571_v14 }
 0x8b9   :  { %1694 = vmatpush1.bf16.msra.mxu1 %v1570_v23 }
 0x8ba   :  { %1695 = vmatprep.subr.bf16.mxu1 %v1575_v58 }
 0x8bd   :  { %1696 = vmatpush1.bf16.msra.mxu1 %v1574_v15 }
 0x8be   :  { %1697 = vmatprep.subr.bf16.mxu1 %v1579_v59  ;;  %v3057_v59 = vld [vmem:[%s4639_s24] ss:$0 sm:$0xff] }
 0x8c1   :  { %1698 = vmatpush1.bf16.msra.mxu1 %v1578_v24 }
 0x8c2   :  { %1699 = vmatprep.subr.bf16.mxu1 %v1583_v61 }
 0x8c5   :  { %1700 = vmatpush1.bf16.msra.mxu1 %v1582_v16 }
 0x8c6   :  { %1701 = vmatprep.subr.bf16.mxu1 %v1587_v63 }
 0x8c9   :  { %1702 = vmatpush1.bf16.msra.mxu1 %v1586_v33 }
 0x8ca   :  { %1703 = vmatprep.subr.bf16.mxu1 %v1591_v0 }
 0x8cd   :  { %1704 = vmatpush1.bf16.msra.mxu1 %v1590_v1 }
 0x8ce   :  { %1705 = vmatprep.subr.bf16.mxu1 %v1595_v2 }
 0x8d1   :  { %1706 = vmatpush1.bf16.msra.mxu1 %v1594_v3 }
 0x8d2   :  { %1707 = vmatprep.subr.bf16.mxu1 %v1599_v4 }
 0x8d5   :  { %1708 = vmatpush1.bf16.msra.mxu1 %v1598_v7 }
 0x8d6   :  { %1709 = vmatprep.subr.bf16.mxu1 %v1603_v8  ;;  %v1930_v8 = vld [vmem:[%s4640_s30 + $0x8] sm:$0xff] }
 0x8d9   :  { %1710 = vmatpush1.bf16.msra.mxu1 %v1602_v41  ;;  %v1929_v41 = vld [vmem:[%s4640_s30] sm:$0xff] }
 0x8da   :  { %1711 = vmatprep.subr.bf16.mxu1 %v1607_v48  ;;  %v1967_v48 = vld [vmem:[%s4641_s4] sm:$0xff] }
 0x8dd   :  { %1712 = vmatpush1.bf16.msra.mxu1 %v1606_v49  ;;  %v1969_v49 = vld [vmem:[%s4641_s4 + $0x10] sm:$0xff] }
 0x8de   :  { %1713 = vmatprep.subr.bf16.mxu1 %v1611_v51 }
 0x8e1   :  { %1714 = vmatpush1.bf16.msra.mxu1 %v1610_v52 }
 0x8e2   :  { %1715 = vmatprep.subr.bf16.mxu1 %v1615_v53 }
 0x8e5   :  { %1716 = vmatpush1.bf16.msra.mxu1 %v1614_v54 }
 0x8e6   :  { %1717 = vmatprep.subr.bf16.mxu1 %v1619_v56  ;;  %v4448_v56 = vand.u32 63, %v4368_v5 }
 0x8e8   :  { %vm1873_vm11 = vcmp.ge.s32.totalorder %v4448_v56, 1  ;;  %vm1877_vm12 = vcmp.lt.s32.totalorder %v4448_v56, 63  ;;  %vm1949_vm14 = vcmp.ge.s32.totalorder %v4448_v56, 2  ;;  %vm1958_vm3 = vcmp.lt.s32.totalorder %v4448_v56, 62 }
 0x8e9   :  { %1718 = vmatpush1.bf16.msra.mxu1 %v1618_v46  ;;  %vm4466_vm15 = vmpackc.low %vm1949_vm14, %vm1949_vm14  ;;  %vm2101_vm5 = vcmp.ge.s32.totalorder %v4448_v56, 4  ;;  %vm2116_vm8 = vcmp.lt.s32.totalorder %v4448_v56, 60 }
 0x8ea   :  { %1719 = vmatprep.subr.bf16.mxu1 %v1623_v57  ;;  %vm4475_vm4 = vmpackc.low %vm1958_vm3, %vm1958_vm3 }
 0x8eb   :  { %vm3394_vm6 = vmpackc.low %vm2101_vm5, %vm2101_vm5 }
 0x8ec   :  { %vm3408_vm9 = vmpackc.low %vm2116_vm8, %vm2116_vm8 }
 0x8ed   :  { %1720 = vmatpush1.bf16.msra.mxu1 %v1622_v42  ;;  %vm3415_vm14 = vmpackc.low %vm2116_vm8, %vm2101_vm5 }
 0x8f0   :  { %1722 = vmatmul.mubr.bf16.vlgmr.msra.gmra.mrb[20].mxu1 %v4401_v20 }
 0x983   :  { %v1682_v18 = vpop.f32.mrb[16].mxu1 }
 0x984   :  { %v1683_v11 = vadd.f32 %v1682_v18, %v1631_v17  ;;  %v1684_v19 = vpop.f32.mrb[17].mxu1 }
 0x985   :  { %v1685_v12 = vadd.f32 %v1684_v19, %v1635_v10  ;;  %v1686_v21 = vpop.f32.mrb[18].mxu1 }
 0x986   :  { %v1730_v13 = vmax.f32 %v1683_v11, 0.0  ;;  %v1687_v22 = vpop.f32.mrb[19].mxu1 }
 0x987   :  { %v1731_v14 = vmax.f32 %v1685_v12, 0.0 }
 0x988   :  { %v1766_v58 = vpack.c.bf16 %v1730_v13, %v1730_v13 }
 0x989   :  { %v1767_v23 = vpack.c.bf16 %v1731_v14, %v1731_v14 }
 0x98b   :  { %1809 = vmatprep.mubr.bf16.mxu0 %v1767_v23 }
 0x98c   :  { %1810 = vmatmul.mubr.bf16.vlgmr.msra.gmra.mrb[8].mxu0 %v1766_v58 }
 0x98d   :  { %3159 = vmatpush3.bf16.msra.mxu0 %v4176_v25  ;;  %v1639_v25 = vrot.slane %v1626_v9, %v433_v6 }
 0x98e   :  { %3160 = vmatprep.subr.bf16.mxu0 %v4203_v34 }
 0x991   :  { %3161 = vmatpush3.bf16.msra.mxu0 %v4179_v26  ;;  %v1643_v26 = vrot.slane %v1626_v9, %v437_v50 }
 0x992   :  { %3162 = vmatprep.subr.bf16.mxu0 %v4206_v35 }
 0x995   :  { %3163 = vmatpush3.bf16.msra.mxu0 %v4182_v27 }
 0x996   :  { %3164 = vmatprep.subr.bf16.mxu0 %v4209_v36 }
 0x999   :  { %3165 = vmatpush3.bf16.msra.mxu0 %v4185_v28 }
 0x99a   :  { %3166 = vmatprep.subr.bf16.mxu0 %v4212_v37 }
 0x99d   :  { %3167 = vmatpush3.bf16.msra.mxu0 %v4188_v29 }
 0x99e   :  { %3168 = vmatprep.subr.bf16.mxu0 %v4215_v38  ;;  %v1880_v38 = vld [vmem:[%s4638_s14 + $0x8] sm:$0xff] }
 0x99f   :  { %1888 = vperm.xlu1 %3666, %v1880_v38  }
 0x9a1   :  { %3169 = vmatpush3.bf16.msra.mxu0 %v4191_v30 }
 0x9a2   :  { %3170 = vmatprep.subr.bf16.mxu0 %v4218_v39  ;;  %v3911_v39 = vmov 1  }
 0x9a3   :  { %3667 = vset.pattern.permute.xlu1 %v3911_v39 }
 0x9a5   :  { %3171 = vmatpush3.bf16.msra.mxu0 %v4194_v31 }
 0x9a6   :  { %3172 = vmatprep.subr.bf16.mxu0 %v4221_v40  ;;  %v1879_v40 = vld [vmem:[%s4638_s14] sm:$0xff] }
 0x9a7   :  { %1898 = vperm.xlu1 %3667, %v1879_v40  }
 0x9a9   :  { %3173 = vmatpush3.bf16.msra.mxu0 %v4197_v32 }
 0x9aa   :  { %3392 = vmatprep.subr.bf16.mxu0 %v3908_v60 }
 0x9ab   :  { %1902 = vperm.xlu1 %3667, %v1880_v38  }
 0x9af   :  { %3670 = vset.pattern.permute.xlu1 %v3912_v44  ;;  %v2644_v44 = vand.u32 3, %v4448_v56 }
 0x9b0   :  { %1918 = vperm.xlu1 %3670, %v1880_v38  }
 0x9b4   :  { %3671 = vset.pattern.permute.xlu1 %v3907_v43 }
 0x9c3   :  { %v1723_v27 = vpop.f32.mrb[20].mxu1 }
 0x9c4   :  { %v1724_v28 = vadd.f32 %v1723_v27, %v1639_v25  ;;  %v1725_v29 = vpop.f32.mrb[21].mxu1 }
 0x9c5   :  { %v1726_v30 = vadd.f32 %v1725_v29, %v1643_v26  ;;  %v1727_v34 = vpop.f32.mrb[22].mxu1 }
 0x9c6   :  { %v1732_v31 = vmax.f32 %v1724_v28, 0.0  ;;  %v1728_v35 = vpop.f32.mrb[23].mxu1 }
 0x9c7   :  { %v1733_v36 = vmax.f32 %v1726_v30, 0.0 }
 0x9c8   :  { %v1768_v32 = vpack.c.bf16 %v1732_v31, %v1732_v31 }
 0x9c9   :  { %v1769_v37 = vpack.c.bf16 %v1733_v36, %v1733_v36  ;;  %v1963_v36 = vld [vmem:[%s4642_s7] sm:$0xff] }
 0x9ca   :  { %3268 = vmatprep.mubr.msk.f32.mxu1 %vm1991_vm13, %v1963_v36 }
 0x9cb   :  { %1849 = vmatprep.mubr.bf16.mxu0 %v1769_v37  ;;  %v1968_v37 = vld [vmem:[%s4641_s4 + $0x8] sm:$0xff] }
 0x9cc   :  { %1850 = vmatmul.mubr.bf16.vlgmr.msra.gmra.mrb[12].mxu0 %v1768_v32  ;;  %v1970_v32 = vld [vmem:[%s4641_s4 + $0x18] sm:$0xff] }
 0x9cd   :  { %3298 = vmatprep.mubr.msk.f32.mxu0 %vm3909_vm1, %v3910_v55 }
 0xa5f   :  { %v3152_v47 = vpop.f32.mrb[8].mxu0 }
 0xa60   :  { %v3153_v50 = vpop.f32.mrb[9].mxu0 }
 0xa61   :  { %v3154_v6 = vadd.f32 %v3153_v50, %v3152_v47  ;;  %v3155_v20 = vpop.f32.mrb[10].mxu0 }
 0xa62   :  { %v3156_v15 = vpop.f32.mrb[11].mxu0 }
 0xa63   :  { %v1812_v16 = vadd.f32 %v3154_v6, %v3057_v59 }
 0xa9f   :  { %v3174_v24 = vpop.f32.mrb[12].mxu0 }
 0xaa0   :  { %v3175_v61 = vpop.f32.mrb[13].mxu0 }
 0xaa1   :  { %v3176_v63 = vadd.f32 %v3175_v61, %v3174_v24  ;;  %v3177_v33 = vpop.f32.mrb[14].mxu0  ;;  %v1964_v24 = vld [vmem:[%s4642_s7 + $0x8] sm:$0xff]  ;;  %v1965_v61 = vld [vmem:[%s4642_s7 + $0x10] sm:$0xff] }
 0xaa2   :  { %v3178_v0 = vpop.f32.mrb[15].mxu0 }
 0xaa3   :  { %v1852_v1 = vadd.f32 %v3176_v63, %v1812_v16  ;;  %v1966_v16 = vld [vmem:[%s4642_s7 + $0x18] sm:$0xff] }
 0xaa5   :  { %3732 = vtanh.f32 %v1852_v1 }
 0xaaf   :  { %v4434_v2 = vpop.eup %3732 }
 0xab0   :  { %v1866_v3 = vrot.slane %v4434_v2, 1 }
 0xab2   :  { %1867 = vrot.lane.b32.xlu0 %v1866_v3, %s3901_s22  ;;  %s4655_s22 = sld [smem:[#allocation40_spill]] }
 0xab6   :  { %1914 = vperm.xlu0 %3668, %v1879_v40  }
 0xaba   :  { %3669 = vset.pattern.permute.xlu0 %v3907_v43  ;;  %v1889_v43 = vpop.permute.xlu1 %1888 }
 0xabb   :  { %1883 = vperm.xlu0 %3669, %v1879_v40  }
 0xabe   :  { %v1899_v51 = vpop.permute.xlu1 %1898 }
 0xac2   :  { %v1903_v52 = vpop.permute.xlu1 %1902 }
 0xac6   :  { %v1919_v54 = vpop.permute.xlu1 %1918 }
 0xb24   :  { %v1868_v4 = vpop.permute.xlu0 %1867 }
 0xb25   :  { %v1870_v7 = vsel %vm523_vm0, %v4434_v2, %v1868_v4 }
 0xb26   :  { %1875 = vrot.lane.b32.xlu0 %v1870_v7, %s3913_s2  ;;  %1871 = vrot.lane.b32.xlu1 %v1870_v7, %s3914_s10  ;;  %v1908_v10 = vrot.slane %v1870_v7, %v4292_v45 }
 0xb28   :  { %v1909_v19 = vmul.f32 %v1908_v10, %v1899_v51  ;;  %v1910_v12 = vmul.f32 %v1908_v10, %v1903_v52 }
 0xb2a   :  { %1938 = vperm.xlu0 %3669, %v1930_v8   ;;  %1933 = vperm.xlu1 %3671, %v1929_v41  }
 0xb2e   :  { %1973 = vperm.xlu0 %3669, %v1967_v48  }
 0xb32   :  { %1983 = vperm.xlu0 %3669, %v1969_v49  }
 0xb35   :  { %v1915_v53 = vpop.permute.xlu0 %1914 }
 0xb3a   :  { %v1884_v46 = vpop.permute.xlu0 %1883 }
 0xb98   :  { %v1872_v57 = vpop.permute.xlu1 %1871  ;;  %v1876_v17 = vpop.permute.xlu0 %1875 }
 0xb99   :  { %v1874_v42 = vsel %vm1873_vm11, %v1872_v57, 0.0  ;;  %v1878_v18 = vsel %vm1877_vm12, %v1876_v17, 0.0  ;;  %v2124_v17 = vld [vmem:[%s4647_s11] sm:$0xff] }
 0xb9a   :  { %v1894_v9 = vrot.slane %v1874_v42, %v4292_v45  ;;  %v1924_v21 = vrot.slane %v1878_v18, %v4292_v45 }
 0xb9c   :  { %v1895_v11 = vmul.f32 %v1894_v9, %v1884_v46  ;;  %v1896_v5 = vmul.f32 %v1894_v9, %v1889_v43  ;;  %v1925_v14 = vmul.f32 %v1924_v21, %v1915_v53  ;;  %v1926_v23 = vmul.f32 %v1924_v21, %v1919_v54 }
 0xb9e   :  { %v1911_v13 = vadd.f32 %v1909_v19, %v1895_v11  ;;  %v1912_v22 = vadd.f32 %v1910_v12, %v1896_v5 }
 0xba0   :  { %v1927_v58 = vadd.f32 %v1925_v14, %v1911_v13  ;;  %v1928_v25 = vadd.f32 %v1926_v23, %v1912_v22 }
 0xba9   :  { %v1934_v26 = vpop.permute.xlu1 %1933  ;;  %v1939_v27 = vpop.permute.xlu0 %1938 }
 0xbaa   :  { %v1941_v28 = vadd.f32 %v1934_v26, %v1927_v58  ;;  %v1942_v29 = vadd.f32 %v1939_v27, %v1928_v25 }
 0xbac   :  { %v1943_v30 = vmax.f32 %v1941_v28, 0.0  ;;  %v1944_v34 = vmax.f32 %v1942_v29, 0.0  ;;  %v2123_v29 = vld [vmem:[%s4648_s21] sm:$0xff] }
 0xbad   :  { %v1974_v33 = vpop.permute.xlu0 %1973 }
 0xbae   :  { %v3672_v31 = vpack.i.bf16 %v1944_v34, %v1943_v30  ;;  %v3382_v35 = vpack.c.bf16 %v1944_v34, %v1943_v30  ;;  %v2205_v30 = vld [vmem:[%s4649_s29] sm:$0xff] }
 0xbb0   :  { %3673 = vrot.lane.b32.xlu1 %v3672_v31, %s3903_s26 }
 0xbb1   :  { %v1984_v49 = vpop.permute.xlu0 %1983 }
 0xbb4   :  { %3678 = vrot.lane.b32.xlu1 %v3672_v31, %s3915_s5 }
 0xbb8   :  { %1978 = vperm.xlu1 %3671, %v1968_v37  }
 0xbbc   :  { %1988 = vperm.xlu1 %3671, %v1970_v32   ;;  %v2206_v32 = vld [vmem:[%s4649_s29 + $0x8] sm:$0xff] }
 0xc22   :  { %v3674_v38 = vpop.permute.xlu1 %3673 }
 0xc23   :  { %v3676_v39 = vunpack.i.h.bf16 %v3674_v38  ;;  %v3675_v40 = vunpack.i.l.bf16 %v3674_v38  ;;  %v2423_v38 = vld [vmem:[%s4650_s15 + $0x8] sm:$0xff] }
 0xc25   :  { %v3376_v47 = vpack.c.bf16 %v3676_v39, %v3675_v40  ;;  %v2422_v39 = vld [vmem:[%s4650_s15] sm:$0xff]  ;;  %v2207_v40 = vld [vmem:[%s4649_s29 + $0x10] sm:$0xff] }
 0xc26   :  { %v3679_v50 = vpop.permute.xlu1 %3678 }
 0xc27   :  { %v3681_v6 = vunpack.i.h.bf16 %v3679_v50  ;;  %v3680_v20 = vunpack.i.l.bf16 %v3679_v50  ;;  %3378 = vmatprep.subr.msk.bf16.mxu1 %vm4466_vm15, %v3376_v47  ;;  %v2425_v50 = vld [vmem:[%s4650_s15 + $0x18] sm:$0xff] }
 0xc28   :  { %3381 = vmatpush3.bf16.msk.msra.mxu1 %vm4466_vm15, %v3376_v47  ;;  %v2208_v47 = vld [vmem:[%s4649_s29 + $0x18] sm:$0xff] }
 0xc29   :  { %3383 = vmatprep.subr.bf16.mxu1 %v3382_v35  ;;  %v3386_v59 = vpack.c.bf16 %v3681_v6, %v3680_v20  ;;  %v2424_v6 = vld [vmem:[%s4650_s15 + $0x10] sm:$0xff]  ;;  %v2307_v20 = vld [vmem:[%s4651_s18] sm:$0xff] }
 0xc2c   :  { %3385 = vmatpush3.bf16.msra.mxu1 %v3382_v35 }
 0xc2d   :  { %3388 = vmatprep.subr.msk.bf16.mxu1 %vm4475_vm4, %v3386_v59 }
 0xc30   :  { %3391 = vmatpush3.bf16.msk.msra.mxu1 %vm4475_vm4, %v3386_v59 }
 0xc33   :  { %3269 = vmatmul.mubr.msk.f32.vlgmr.msra.gmra.mrb[24].mxu1 %vm1991_vm13, %v1964_v24 }
 0xc34   :  { %3271 = vmatprep.mubr.msk.f32.mxu1 %vm1991_vm13, %v1965_v61 }
 0xc37   :  { %3272 = vmatmul.mubr.msk.f32.gmra.mrb[26].mxu1 %vm1991_vm13, %v1966_v16  ;;  %v1979_v63 = vpop.permute.xlu1 %1978  ;;  %vm2209_vm13 = vcmask 64512   ;;  %v2308_v16 = vld [vmem:[%s4651_s18 + $0x8] sm:$0xff] }
 0xc38   :  { %3303 = vmatprep.mubr.msk.f32.mxu1 %vm2209_vm13, %v2205_v30 }
 0xc3b   :  { %v1989_v8 = vpop.permute.xlu1 %1988 }
 0xd06   :  { %v3270_v0 = vpop.f32.mrb[24].mxu1 }
 0xd07   :  { %v2076_v1 = vadd.f32 %v3270_v0, %v1979_v63  ;;  %v2070_v3 = vpop.f32.mrb[25].mxu1  ;;  %v2309_v63 = vld [vmem:[%s4651_s18 + $0x10] sm:$0xff] }
 0xd08   :  { %v2071_v4 = vadd.f32 %v2070_v3, %v1974_v33  ;;  %v2310_v33 = vld [vmem:[%s4651_s18 + $0x18] sm:$0xff] }
 0xd09   :  { %v2090_v7 = vmax.f32 %v2076_v1, 0.0 }
 0xd0a   :  { %v2089_v41 = vmax.f32 %v2071_v4, 0.0  ;;  %v3273_v48 = vpop.f32.mrb[26].mxu1 }
 0xd0b   :  { %v2086_v43 = vadd.f32 %v3273_v48, %v1989_v8  ;;  %v2080_v51 = vpop.f32.mrb[27].mxu1 }
 0xd0c   :  { %v3401_v52 = vpack.c.bf16 %v2090_v7, %v2089_v41  ;;  %v2081_v53 = vadd.f32 %v2080_v51, %v1984_v49  ;;  %v3682_v54 = vpack.i.bf16 %v2090_v7, %v2089_v41  ;;  %v2414_v7 = vand.u32 7, %v4448_v56 }
 0xd0d   :  { %v2092_v46 = vmax.f32 %v2086_v43, 0.0 }
 0xd0e   :  { %v2091_v57 = vmax.f32 %v2081_v53, 0.0  ;;  %3683 = vrot.lane.b32.xlu0 %v3682_v54, %s3900_s23  ;;  %vm4535_vm3 = vcmp.eq.s32.totalorder %v2414_v7, 0 }
 0xd10   :  { %v3404_v42 = vpack.c.bf16 %v2092_v46, %v2091_v57  ;;  %v3687_v9 = vpack.i.bf16 %v2092_v46, %v2091_v57 }
 0xd12   :  { %3693 = vrot.lane.b32.xlu0 %v3682_v54, %s3916_s16  ;;  %3688 = vrot.lane.b32.xlu1 %v3687_v9, %s3900_s23 }
 0xd16   :  { %2127 = vperm.xlu0 %3669, %v2124_v17   ;;  %3698 = vrot.lane.b32.xlu1 %v3687_v9, %s3916_s16 }
 0xd80   :  { %v3684_v10 = vpop.permute.xlu0 %3683 }
 0xd81   :  { %v3686_v18 = vunpack.i.h.bf16 %v3684_v10  ;;  %v3685_v11 = vunpack.i.l.bf16 %v3684_v10 }
 0xd83   :  { %v3393_v5 = vpack.c.bf16 %v3686_v18, %v3685_v11 }
 0xd84   :  { %v3689_v19 = vpop.permute.xlu1 %3688  ;;  %v3694_v22 = vpop.permute.xlu0 %3693 }
 0xd85   :  { %v3691_v12 = vunpack.i.h.bf16 %v3689_v19  ;;  %v3690_v21 = vunpack.i.l.bf16 %v3689_v19  ;;  %3395 = vmatpush3.bf16.msk.msra.mxu0 %vm3394_vm6, %v3393_v5  ;;  %v3696_v14 = vunpack.i.h.bf16 %v3694_v22  ;;  %v3695_v23 = vunpack.i.l.bf16 %v3694_v22 }
 0xd86   :  { %3396 = vmatprep.subr.bf16.mxu0 %v3908_v60 }
 0xd87   :  { %v3397_v13 = vpack.c.bf16 %v3691_v12, %v3690_v21  ;;  %v3407_v25 = vpack.c.bf16 %v3696_v14, %v3695_v23 }
 0xd88   :  { %v3699_v58 = vpop.permute.xlu1 %3698 }
 0xd89   :  { %3399 = vmatpush3.bf16.msk.msra.mxu0 %vm3394_vm6, %v3397_v13  ;;  %v3701_v26 = vunpack.i.h.bf16 %v3699_v58  ;;  %v3700_v27 = vunpack.i.l.bf16 %v3699_v58 }
 0xd8a   :  { %3400 = vmatprep.subr.bf16.mxu0 %v3908_v60 }
 0xd8b   :  { %v3411_v28 = vpack.c.bf16 %v3701_v26, %v3700_v27  ;;  %v2650_v26 = vld [vmem:[%s4656_s19] sm:$0xff] }
 0xd8d   :  { %3402 = vmatpush3.bf16.msra.mxu0 %v3401_v52 }
 0xd8e   :  { %3403 = vmatprep.subr.bf16.mxu0 %v3908_v60 }
 0xd91   :  { %3405 = vmatpush3.bf16.msra.mxu0 %v3404_v42 }
 0xd92   :  { %3406 = vmatprep.subr.bf16.mxu0 %v3908_v60 }
 0xd95   :  { %3409 = vmatpush3.bf16.msk.msra.mxu0 %vm3408_vm9, %v3407_v25  ;;  %v2128_v34 = vpop.permute.xlu0 %2127  ;;  %v2537_v25 = vld [vmem:[%s4655_s22] sm:$0xff] }
 0xd96   :  { %3410 = vmatprep.subr.bf16.mxu0 %v3908_v60 }
 0xd99   :  { %3413 = vmatpush3.bf16.msk.msra.mxu0 %vm3408_vm9, %v3411_v28  ;;  %v2651_v28 = vld [vmem:[%s4656_s19 + $0x8] sm:$0xff] }
 0xd9c   :  { %3299 = vmatmul.mubr.msk.f32.vlgmr.msra.gmra.mrb[16].mxu0 %vm2130_vm10, %v2123_v29 }
 0xd9d   :  { %3346 = vmatprep.mubr.msk.f32.mxu0 %vm523_vm0, %v2537_v25 }
 0xe6f   :  { %v2200_v31 = vpop.f32.mrb[16].mxu0 }
 0xe70   :  { %v2201_v35 = vadd.f32 %v2200_v31, %v2128_v34  ;;  %v3300_v36 = vpop.f32.mrb[17].mxu0 }
 0xe72   :  { %v2204_v37 = vmax.f32 %v2201_v35, 0.0 }
 0xe74   :  { %2314 = vrot.lane.b32.xlu0 %v2204_v37, %s3916_s16  ;;  %2311 = vrot.lane.b32.xlu1 %v2204_v37, %s3900_s23  ;;  %s4654_s23 = sld [smem:[#allocation39_spill]] }
 0xe75   :  { %3301 = vmatprep.subr.mxu1 %v2204_v37 }
 0xe76   :  { %3302 = vmatpush3.msra.mxu1 %v2204_v37 }
 0xe77   :  { %3304 = vmatmul.mubr.msk.f32.vlgmr.msra.gmra.mrb[28].mxu1 %vm2209_vm13, %v2206_v32 }
 0xe78   :  { %2433 = vperm.xlu0 %3669, %v2423_v38   ;;  %2428 = vperm.xlu1 %3671, %v2422_v39  }
 0xe79   :  { %3306 = vmatprep.mubr.msk.f32.mxu1 %vm2209_vm13, %v2207_v40 }
 0xe7a   :  { %v2454_v58 = vld [vmem:[%s4654_s23] sm:$0xff]  ;;  %v2455_v27 = vld [vmem:[%s4654_s23 + $0x8] sm:$0xff] }
 0xe7b   :  { %3307 = vmatmul.mubr.msk.f32.gmra.mrb[30].mxu1 %vm2209_vm13, %v2208_v47 }
 0xe7c   :  { %2443 = vperm.xlu0 %3669, %v2425_v50   ;;  %2438 = vperm.xlu1 %3671, %v2424_v6  }
 0xe7d   :  { %3313 = vmatprep.mubr.msk.f32.mxu1 %vm1389_vm7, %v2307_v20 }
 0xee6   :  { %v2315_v59 = vpop.permute.xlu0 %2314  ;;  %v2312_v24 = vpop.permute.xlu1 %2311 }
 0xee7   :  { %v3414_v61 = vpack.c.bf16 %v2315_v59, %v2312_v24  ;;  %v2538_v24 = vld [vmem:[%s4655_s22 + $0x8] sm:$0xff] }
 0xee9   :  { %3416 = vmatprep.subr.msk.bf16.mxu1 %vm3415_vm14, %v3414_v61 }
 0xeea   :  { %3419 = vmatpush3.bf16.msk.msra.mxu1 %vm3415_vm14, %v3414_v61 }
 0xeed   :  { %3314 = vmatmul.mubr.msk.f32.vlgmr.msra.gmra.mrb[32].mxu1 %vm1389_vm7, %v2308_v16 }
 0xeee   :  { %3316 = vmatprep.mubr.msk.f32.mxu1 %vm1389_vm7, %v2309_v63 }
 0xef1   :  { %3317 = vmatmul.mubr.msk.f32.gmra.mrb[34].mxu1 %vm1389_vm7, %v2310_v33 }
 0xef2   :  { %3327 = vmatprep.mubr.msk.f32.mxu1 %vm1280_vm2, %v2454_v58 }
 0xef7   :  { %v2434_v41 = vpop.permute.xlu0 %2433  ;;  %v2429_v48 = vpop.permute.xlu1 %2428 }
 0xefb   :  { %v2444_v42 = vpop.permute.xlu0 %2443  ;;  %v2439_v18 = vpop.permute.xlu1 %2438 }
 0xf4a   :  { %v3305_v0 = vpop.f32.mrb[28].mxu1 }
 0xf4b   :  { %v2288_v1 = vpop.f32.mrb[29].mxu1 }
 0xf4e   :  { %v3308_v3 = vpop.f32.mrb[30].mxu1 }
 0xf4f   :  { %v2298_v4 = vpop.f32.mrb[31].mxu1 }
 0xfc0   :  { %v3315_v49 = vpop.f32.mrb[32].mxu1 }
 0xfc1   :  { %v2419_v43 = vsel %vm4535_vm3, %v3305_v0, %v3315_v49  ;;  %v2395_v51 = vpop.f32.mrb[33].mxu1 }
 0xfc2   :  { %v2447_v52 = vadd.f32 %v2434_v41, %v2419_v43  ;;  %v2418_v53 = vsel %vm4535_vm3, %v2288_v1, %v2395_v51  ;;  %v2833_v43 = vld [vmem:[#allocation6] sm:$0x1] }
 0xfc3   :  { %v2446_v54 = vadd.f32 %v2429_v48, %v2418_v53  ;;  %v2666_v51 = vld [vmem:[%s4657_s0] sm:$0x1] }
 0xfc4   :  { %v2451_v46 = vmax.f32 %v2447_v52, 0.0  ;;  %v3318_v57 = vpop.f32.mrb[34].mxu1 }
 0xfc5   :  { %v2450_v9 = vmax.f32 %v2446_v54, 0.0  ;;  %v2421_v17 = vsel %vm4535_vm3, %v3308_v3, %v3318_v57  ;;  %v2405_v10 = vpop.f32.mrb[35].mxu1 }
 0xfc6   :  { %v2449_v11 = vadd.f32 %v2444_v42, %v2421_v17  ;;  %v2420_v5 = vsel %vm4535_vm3, %v2298_v4, %v2405_v10 }
 0xfc7   :  { %v2448_v19 = vadd.f32 %v2439_v18, %v2420_v5  ;;  %v3702_v12 = vpack.i.bf16 %v2451_v46, %v2450_v9  ;;  %v3420_v21 = vpack.c.bf16 %v2451_v46, %v2450_v9 }
 0xfc8   :  { %v2453_v13 = vmax.f32 %v2449_v11, 0.0 }
 0xfc9   :  { %v2452_v22 = vmax.f32 %v2448_v19, 0.0  ;;  %3703 = vrot.lane.b32.xlu1 %v3702_v12, %s3903_s26  ;;  %3421 = vmatprep.subr.bf16.mxu1 %v3420_v21 }
 0xfca   :  { %3423 = vmatpush3.bf16.msra.mxu1 %v3420_v21 }
 0xfcb   :  { %v3707_v14 = vpack.i.bf16 %v2453_v13, %v2452_v22  ;;  %v3424_v23 = vpack.c.bf16 %v2453_v13, %v2452_v22 }
 0xfcd   :  { %3713 = vrot.lane.b32.xlu1 %v3702_v12, %s3915_s5  ;;  %3708 = vrot.lane.b32.xlu0 %v3707_v14, %s3903_s26  ;;  %s4658_s26 = sld [smem:[#allocation43_spill]] }
 0xfce   :  { %3425 = vmatprep.subr.bf16.mxu1 %v3424_v23 }
 0xfcf   :  { %3427 = vmatpush3.bf16.msra.mxu1 %v3424_v23 }
 0xfd0   :  { %3452 = vmatprep.subr.bf16.mxu1 %v3908_v60 }
 0xfd1   :  { %2654 = vperm.xlu1 %3671, %v2650_v26   ;;  %3718 = vrot.lane.b32.xlu0 %v3707_v14, %s3915_s5 }
 0xfd2   :  { %3328 = vmatmul.mubr.msk.f32.vlgmr.msra.gmra.mrb[36].mxu1 %vm1280_vm2, %v2455_v27 }
 0xfd3   :  { %3353 = vmatprep.mubr.msk.f32.mxu1 %vm3909_vm1, %v3910_v55  ;;  %v2740_v10 = vld [vmem:[%s4658_s26] sm:$0x1] }
 0xfd5   :  { %2659 = vperm.xlu0 %3669, %v2651_v28  }
0x103b   :  { %v3704_v29 = vpop.permute.xlu1 %3703 }
0x103c   :  { %v3706_v30 = vunpack.i.h.bf16 %v3704_v29  ;;  %v3705_v34 = vunpack.i.l.bf16 %v3704_v29 }
0x103e   :  { %v3428_v31 = vpack.c.bf16 %v3706_v30, %v3705_v34 }
0x103f   :  { %v3714_v35 = vpop.permute.xlu1 %3713  ;;  %v3709_v36 = vpop.permute.xlu0 %3708 }
0x1040   :  { %v3716_v37 = vunpack.i.h.bf16 %v3714_v35  ;;  %v3715_v32 = vunpack.i.l.bf16 %v3714_v35  ;;  %v3711_v38 = vunpack.i.h.bf16 %v3709_v36  ;;  %v3710_v39 = vunpack.i.l.bf16 %v3709_v36  ;;  %3430 = vmatprep.subr.msk.bf16.mxu0 %vm4466_vm15, %v3428_v31 }
0x1041   :  { %3433 = vmatpush3.bf16.msk.msra.mxu0 %vm4466_vm15, %v3428_v31 }
0x1042   :  { %v3434_v40 = vpack.c.bf16 %v3711_v38, %v3710_v39  ;;  %v3440_v50 = vpack.c.bf16 %v3716_v37, %v3715_v32 }
0x1043   :  { %v3719_v47 = vpop.permute.xlu0 %3718 }
0x1044   :  { %v3721_v6 = vunpack.i.h.bf16 %v3719_v47  ;;  %v3720_v20 = vunpack.i.l.bf16 %v3719_v47  ;;  %3436 = vmatprep.subr.msk.bf16.mxu0 %vm4466_vm15, %v3434_v40 }
0x1045   :  { %3439 = vmatpush3.bf16.msk.msra.mxu0 %vm4466_vm15, %v3434_v40  ;;  %vm2645_vm15 = vcmp.eq.s32.totalorder %v2644_v44, 0 }
0x1046   :  { %3442 = vmatprep.subr.msk.bf16.mxu0 %vm4475_vm4, %v3440_v50  ;;  %v3446_v59 = vpack.c.bf16 %v3721_v6, %v3720_v20 }
0x1049   :  { %3445 = vmatpush3.bf16.msk.msra.mxu0 %vm4475_vm4, %v3440_v50 }
0x104a   :  { %3448 = vmatprep.subr.msk.bf16.mxu0 %vm4475_vm4, %v3446_v59 }
0x104d   :  { %3451 = vmatpush3.bf16.msk.msra.mxu0 %vm4475_vm4, %v3446_v59  ;;  %vm1863_vm4 = vcmask 779264  }
0x1050   :  { %3347 = vmatmul.mubr.msk.f32.vlgmr.msra.gmra.mrb[18].mxu0 %vm523_vm0, %v2538_v24  ;;  %v2655_v3 = vpop.permute.xlu1 %2654  ;;  %vm3457_vm0 = vmpackc.low %vm1873_vm11, %vm1873_vm11 }
0x1054   :  { %v2660_v33 = vpop.permute.xlu0 %2659 }
0x10a5   :  { %v3329_v61 = vpop.f32.mrb[36].mxu1 }
0x10a6   :  { %v2528_v16 = vpop.f32.mrb[37].mxu1 }
0x1123   :  { %v3348_v63 = vpop.f32.mrb[18].mxu0 }
0x1124   :  { %v2649_v0 = vsel %vm2645_vm15, %v3329_v61, %v3348_v63  ;;  %v2635_v1 = vpop.f32.mrb[19].mxu0 }
0x1125   :  { %v2663_v4 = vadd.f32 %v2660_v33, %v2649_v0  ;;  %v2648_v7 = vsel %vm2645_vm15, %v2528_v16, %v2635_v1 }
0x1126   :  { %v2662_v8 = vadd.f32 %v2655_v3, %v2648_v7 }
0x1127   :  { %v2665_v41 = vmax.f32 %v2663_v4, 0.0 }
0x1128   :  { %v2664_v15 = vmax.f32 %v2662_v8, 0.0 }
0x112a   :  { %v3727_v48 = vpack.i.bf16 %v2665_v41, %v2664_v15  ;;  %v3453_v49 = vpack.c.bf16 %v2665_v41, %v2664_v15 }
0x112c   :  { %3728 = vrot.lane.b32.xlu0 %v3727_v48, %s3913_s2  ;;  %3723 = vrot.lane.b32.xlu1 %v3727_v48, %s3914_s10 }
0x112d   :  { %3454 = vmatpush3.bf16.msra.mxu1 %v3453_v49 }
0x112e   :  { %3455 = vmatprep.subr.bf16.mxu1 %v3908_v60 }
0x1130   :  { %1859 = vrot.lane.b32.xlu0 %v4434_v2, %s3917_s12  ;;  %2836 = vperm.xlu1 %3671, %v2833_v43  }
0x1131   :  { %3354 = vmatmul.mubr.msk.f32.vlgmr.msra.gmra.mrb[38].mxu1 %vm1389_vm7, %v2666_v51 }
0x1132   :  { %3364 = vmatprep.mubr.msk.f32.mxu1 %vm3909_vm1, %v3910_v55  ;;  %vm3461_vm1 = vmpackc.low %vm1877_vm12, %vm1877_vm12 }
0x119e   :  { %v3729_v52 = vpop.permute.xlu0 %3728  ;;  %v3724_v53 = vpop.permute.xlu1 %3723 }
0x119f   :  { %v3726_v54 = vunpack.i.h.bf16 %v3724_v53  ;;  %v3725_v46 = vunpack.i.l.bf16 %v3724_v53  ;;  %v3731_v57 = vunpack.i.h.bf16 %v3729_v52  ;;  %v3730_v42 = vunpack.i.l.bf16 %v3729_v52 }
0x11a1   :  { %v3456_v9 = vpack.c.bf16 %v3726_v54, %v3725_v46  ;;  %v3460_v55 = vpack.c.bf16 %v3731_v57, %v3730_v42 }
0x11a2   :  { %v1860_v2 = vpop.permute.xlu0 %1859 }
0x11a3   :  { %v1862_v17 = vsel %vm1280_vm2, %v4360_v62, %v1860_v2  ;;  %3458 = vmatpush3.bf16.msk.msra.mxu1 %vm3457_vm0, %v3456_v9 }
0x11a4   :  { %1864 = vst.msk [vmem:[%s4085_s27] sm:$0x3] %vm1863_vm4, %v1862_v17  ;;  %3459 = vmatprep.subr.bf16.mxu1 %v3908_v60 }
0x11a7   :  { %3462 = vmatpush3.bf16.msk.msra.mxu1 %vm3461_vm1, %v3460_v55 }
0x11aa   :  { %3365 = vmatmul.mubr.msk.f32.vlgmr.msra.gmra.mrb[40].mxu1 %vm1280_vm2, %v2740_v10 }
0x1204   :  { %v2736_v18 = vpop.f32.mrb[38].mxu1 }
0x1205   :  { %v3355_v11 = vpop.f32.mrb[39].mxu1 }
0x1206   :  { %3835 = shalt.err (!%p3832_p8)
}
0x1207   :  { %s3836_s27 = scalar_lea.hbm %s4095_s6, 16 }
0x1208   :  { %p3837_p9 = scmp.ne.s32.totalorder %s4095_s6, %s3836_s27  ;;  %p3840_p10 = scmp.lt.u32.totalorder %s3836_s27, %s4095_s6 }
0x120a   :  { %p3842_p11 = pnand %p3840_p10, %p3837_p9 }
0x120c   :  { %3845 = shalt.err (!%p3842_p11)
}
0x120d   :  { %2861 = dma.vmem_to_hbm [thread:$0]  %s2859_s28, 16, %s4095_s6, [#allocation9]   ;;  %v2830_v60 = vand.u32 1, %v4448_v56  ;;  %v2837_v62 = vpop.permute.xlu1 %2836 }
0x120e   :  { %v2842_v5 = vrot.slane %v2837_v62, %v4292_v45 }
0x120f   :  { %vm2831_vm2 = vcmp.eq.s32.totalorder %v2830_v60, 0 }
0x127d   :  { %v2826_v19 = vpop.f32.mrb[40].mxu1 }
0x127e   :  { %v2832_v12 = vsel %vm2831_vm2, %v2736_v18, %v2826_v19  ;;  %v3366_v21 = vpop.f32.mrb[41].mxu1 }
0x127f   :  { %v2843_v13 = vadd.f32 %v2842_v5, %v2832_v12 }
0x1281   :  { %3734 = vtanh.f32 %v2843_v13 }
0x128b   :  { %v3735_v22 = vpop.eup %3734 }
0x128c   :  { %2845 = vst [vmem:[%s4080_s20] sm:$0x1] %v3735_v22 }
0x128d   :  { %3858 = dma.done.wait [#allocation9], 16  }
0x128e   :  { %3859 = vsyncadd [#allocation9], 4294967280 }
0x128f   :  { %2871 = vsyncpa [#allocation8], 1 }
0x1290   :  { %2872 = vsyncpa [#allocation11], 1 }
0x1291   :  { %2873 = vsyncpa [#allocation14], 1 }
0x1292   :  { %2874 = vsyncpa [#allocation9], 1 }
0x1293   :  { %2875 = vsyncmov [#allocation5] }
0x1296   :  { %s2876_s6 = vpop.sfrf %2875 }
0x1297   :  { %p3103_p12 = scmp.ne.s32.totalorder %s2876_s6, 0 }
0x1299   :  { %2880 = shalt.err (%p3103_p12)  }
0x129a   :  { %2882 = vsyncmov [#allocation5 + $0x1] }
0x129d   :  { %s2883_s17 = vpop.sfrf %2882 }
0x129e   :  { %p3104_p13 = scmp.ne.s32.totalorder %s2883_s17, 0 }
0x12a0   :  { %2887 = shalt.err (%p3104_p13)  }
0x12a1   :  { %2889 = vsyncmov [#allocation5 + $0x2] }
0x12a4   :  { %s2890_s25 = vpop.sfrf %2889 }
0x12a5   :  { %p3105_p0 = scmp.ne.s32.totalorder %s2890_s25, 0 }
0x12a7   :  { %2894 = shalt.err (%p3105_p0)  }

</bundles_post_ra>
